<compile_context>
chip_gen: v5e
topology: v5e:2x2
jax: 0.10.0
libtpu: 0.0.40
codegen_flags: <defaults>
</compile_context>

<pallas_src>
import jax
import jax.numpy as jnp
from jax.experimental import pallas as pl
from jax.experimental.pallas import tpu as pltpu

_VMEM = pltpu.MemorySpace.VMEM


def _vmem_specs(k):
    return [pl.BlockSpec(memory_space=_VMEM) for _ in range(k)]


def _leaky(x, slope):
    return jnp.where(x >= 0, x, slope * x)


# ----------------------------------------------------------------------------
# Fused forward kernel
# ----------------------------------------------------------------------------
def _gat_fused_kernel(x_ref, eattr_ref, src_ref, dst_ref, dstr_ref,
                      w1_ref, w2_ref, w3_ref, ab1_ref, ab2_ref, ab3_ref,
                      weae_ref, ewsrc_ref, ewdst_ref, ewe_ref, efb1_ref,
                      efw2_ref, efb2_ref, hw1_ref, hb1_ref, hw2_ref, hb2_ref,
                      out_ref):
    f32 = jnp.float32
    x = x_ref[...]                       # (N, C)
    eattr = eattr_ref[...]               # (E, D)
    n = x.shape[0]
    e = eattr.shape[0]

    # --- graph structure, built in-kernel (no HBM N^2 traffic, no XLA scatters)
    src_oh = (jax.lax.broadcasted_iota(jnp.int32, (e, n), 1)
              == src_ref[...]).astype(f32)                       # (E, N)
    dst_oh = (jax.lax.broadcasted_iota(jnp.int32, (e, n), 1)
              == dst_ref[...]).astype(f32)                       # (E, N)
    dst_ohT = (jax.lax.broadcasted_iota(jnp.int32, (n, e), 0)
               == dstr_ref[...]).astype(f32)                     # (N, E)
    eye = (jax.lax.broadcasted_iota(jnp.int32, (n, n), 0)
           == jax.lax.broadcasted_iota(jnp.int32, (n, n), 1)).astype(f32)

    # adjacency mask, rows = dst, cols = src, incl. self loops; reused by all layers
    mask = jnp.dot(dst_ohT, src_oh, preferred_element_type=f32) + eye
    mask_b = mask > 0.5
    neg_inf = jnp.float32(-1e30)

    # self-loop edge_attr: mean of attrs of incoming edges (fill_value='mean')
    loop_sum = jnp.dot(dst_ohT, eattr, preferred_element_type=f32)       # (N, D)
    counts = jnp.sum(dst_ohT, axis=-1, keepdims=True)                    # (N, 1)
    loop_attr = loop_sum / jnp.maximum(counts, 1.0)

    # per-edge attention alphas for all 3 layers at once:
    # alpha = (edge_attr @ We) . att_edge = edge_attr @ (We @ att_edge^T)
    alpha_e = jnp.dot(eattr, weae_ref[...], preferred_element_type=f32)      # (E, 3)
    alpha_loop = jnp.dot(loop_attr, weae_ref[...], preferred_element_type=f32)  # (N, 3)

    # --- three GATConv layers + outer LeakyReLU(0.01), all resident in VMEM
    h = x
    layer_refs = ((w1_ref, ab1_ref), (w2_ref, ab2_ref), (w3_ref, ab3_ref))
    for l, (w_ref, ab_ref) in enumerate(layer_refs):
        ab = ab_ref[...]                               # (3, F): att_src / att_dst / bias
        att_src = ab[0:1, :]
        att_dst = ab[1:2, :]
        bias = ab[2:3, :]

        xs = jnp.dot(h, w_ref[...], preferred_element_type=f32)          # (N, F)

        # dense per-layer edge-alpha matrix, never materialized in HBM
        ealpha = (jnp.dot(dst_ohT, src_oh * alpha_e[:, l:l + 1],
                          preferred_element_type=f32)
                  + eye * alpha_loop[:, l:l + 1])                         # (N, N)

        a_dst = jnp.sum(xs * att_dst, axis=-1, keepdims=True)             # (N, 1) VPU+XLU
        a_src = jax.lax.dot_general(att_src, xs, (((1,), (1,)), ((), ())),
                                    preferred_element_type=f32)           # (1, N)

        s = a_dst + a_src + ealpha
        s = _leaky(s, 0.2)                                                # leaky_relu(0.2)
        s = jnp.where(mask_b, s, neg_inf)

        m = jnp.max(s, axis=-1, keepdims=True)
        p = jnp.where(mask_b, jnp.exp(s - m), 0.0)
        p = p * pl.reciprocal(jnp.sum(p, axis=-1, keepdims=True), approx=True)

        h = jnp.dot(p, xs, preferred_element_type=f32) + bias
        h = _leaky(h, 0.01)                                               # outer LeakyReLU

    # --- edge MLP: concat([h[src], h[dst], edge_attr]) @ W1 as split matmuls
    hs = jnp.dot(h, ewsrc_ref[...], preferred_element_type=f32)           # (N, 4H)
    hd = jnp.dot(h, ewdst_ref[...], preferred_element_type=f32)           # (N, 4H)
    h1 = (jnp.dot(src_oh, hs, preferred_element_type=f32)                 # gather via one-hot
          + jnp.dot(dst_oh, hd, preferred_element_type=f32)
          + jnp.dot(eattr, ewe_ref[...], preferred_element_type=f32)
          + efb1_ref[...])
    h1 = _leaky(h1, 0.01)
    cf = jnp.dot(h1, efw2_ref[...], preferred_element_type=f32) + efb2_ref[...]
    cf = _leaky(cf, 0.01)

    # --- both prediction heads fused (block-diagonal second layer) -> (E, 2)
    hh = jnp.dot(cf, hw1_ref[...], preferred_element_type=f32) + hb1_ref[...]
    hh = _leaky(hh, 0.01)
    o2 = jnp.dot(hh, hw2_ref[...], preferred_element_type=f32) + hb2_ref[...]  # (E, 2)

    te = pl.reciprocal(1.0 + jnp.exp(-o2[:, 0:1]), approx=True)           # Sigmoid
    tv = o2[:, 1:2]
    out_ref[...] = jnp.concatenate([te * tv, te], axis=1)                 # [final_pred, exists]


# ----------------------------------------------------------------------------
# Wrapper: one-time parameter packing + single pallas_call per forward
# ----------------------------------------------------------------------------
def pack_params(params):
    """One-time parameter transform (done outside the per-step forward)."""
    convs = params["convs"]
    h4 = convs[2]["W"].shape[1]

    packed = dict(
        Ws=[p["W"] for p in convs],
        attb=[jnp.concatenate([p["att_src"], p["att_dst"], p["bias"]], axis=0)
              for p in convs],                                              # (3, F) each
        we_ae=jnp.concatenate([p["We"] @ p["att_edge"].T for p in convs],
                              axis=1),                                      # (D, 3)
        ew_src=params["ef_w1"][:h4],                                        # (4H, 4H)
        ew_dst=params["ef_w1"][h4:2 * h4],                                  # (4H, 4H)
        ew_e=params["ef_w1"][2 * h4:],                                      # (D, 4H)
        ef_b1=params["ef_b1"],
        ef_w2=params["ef_w2"],
        ef_b2=params["ef_b2"],
        head_w1=jnp.concatenate([params["tc_w1"], params["vr_w1"]], axis=1),  # (2H, 2H)
        head_b1=jnp.concatenate([params["tc_b1"], params["vr_b1"]], axis=1),  # (1, 2H)
    )
    hid = params["tc_w1"].shape[1]
    z = jnp.zeros((hid, 1), jnp.float32)
    packed["head_w2"] = jnp.concatenate(
        [jnp.concatenate([params["tc_w2"], z], axis=1),
         jnp.concatenate([z, params["vr_w2"]], axis=1)], axis=0)            # (2H, 2)
    packed["head_b2"] = jnp.concatenate([params["tc_b2"], params["vr_b2"]], axis=1)  # (1, 2)
    return packed


def gat_forward(packed, x, edge_index, edge_attr):
    e = edge_attr.shape[0]
    src = edge_index[0].astype(jnp.int32)[:, None]      # (E, 1)
    dst = edge_index[1].astype(jnp.int32)[:, None]      # (E, 1)
    dst_row = edge_index[1].astype(jnp.int32)[None, :]  # (1, E)

    args = (x, edge_attr, src, dst, dst_row,
            packed["Ws"][0], packed["Ws"][1], packed["Ws"][2],
            packed["attb"][0], packed["attb"][1], packed["attb"][2],
            packed["we_ae"],
            packed["ew_src"], packed["ew_dst"], packed["ew_e"], packed["ef_b1"],
            packed["ef_w2"], packed["ef_b2"],
            packed["head_w1"], packed["head_b1"], packed["head_w2"], packed["head_b2"])

    out = pl.pallas_call(
        _gat_fused_kernel,
        out_shape=jax.ShapeDtypeStruct((e, 2), jnp.float32),
        in_specs=_vmem_specs(len(args)),
        out_specs=pl.BlockSpec(memory_space=_VMEM),
    )(*args)

    final_pred = out[:, 0:1]
    trade_exists = out[:, 1:2]
    return final_pred, trade_exists


# ----------------------------------------------------------------------------
# Deterministic parameter init (matches the PyTorch module's layer shapes)
# ----------------------------------------------------------------------------
def init_params(key, in_c, hid, edim):
    keys = iter(jax.random.split(key, 64))

    def glorot(shape):
        fan_in, fan_out = shape
        lim = (6.0 / (fan_in + fan_out)) ** 0.5
        return jax.random.uniform(next(keys), shape, jnp.float32, -lim, lim)

    def kaiming_linear(shape):  # (in, out); kaiming_normal, fan_in, gain=1 ('linear')
        return jax.random.normal(next(keys), shape, jnp.float32) / jnp.sqrt(
            jnp.float32(shape[0]))

    def bias_uniform(fan_in, out):
        lim = 1.0 / (fan_in ** 0.5)
        return jax.random.uniform(next(keys), (1, out), jnp.float32, -lim, lim)

    convs = []
    for fin, fout in [(in_c, hid), (hid, hid * 2), (hid * 2, hid * 4)]:
        convs.append(dict(
            W=glorot((fin, fout)),
            We=glorot((edim, fout)),
            att_src=glorot((1, fout)),
            att_dst=glorot((1, fout)),
            att_edge=glorot((1, fout)),
            bias=jnp.zeros((1, fout), jnp.float32),
        ))

    h4 = hid * 4
    return dict(
        convs=convs,
        ef_w1=kaiming_linear((h4 * 2 + edim, h4)), ef_b1=bias_uniform(h4 * 2 + edim, h4),
        ef_w2=kaiming_linear((h4, hid * 2)),       ef_b2=bias_uniform(h4, hid * 2),
        tc_w1=kaiming_linear((hid * 2, hid)),      tc_b1=bias_uniform(hid * 2, hid),
        tc_w2=kaiming_linear((hid, 1)),            tc_b2=bias_uniform(hid, 1),
        vr_w1=kaiming_linear((hid * 2, hid)),      vr_b1=bias_uniform(hid * 2, hid),
        vr_w2=kaiming_linear((hid, 1)),            vr_b2=bias_uniform(hid, 1),
    )


# ----------------------------------------------------------------------------
if __name__ == "__main__":
    N, IN_C, HID, EDIM = 16, 8, 16, 4

    key = jax.random.PRNGKey(0)
    kx, ke, kp = jax.random.split(key, 3)

    # Unique, self-loop-free ring edges: (i, (i+k) % N) for k in {1, 2, 3}.
    base = jnp.arange(N, dtype=jnp.int32)
    src = jnp.concatenate([base, base, base])
    dst = jnp.concatenate([(base + 1) % N, (base + 2) % N, (base + 3) % N])
    edge_index = jnp.stack([src, dst])                      # [2, E], E = 48
    E = edge_index.shape[1]

    x = jax.random.normal(kx, (N, IN_C), jnp.float32)       # [N, C] node features
    edge_attr = jax.random.normal(ke, (E, EDIM), jnp.float32)

    params = init_params(kp, IN_C, HID, EDIM)
    packed = pack_params(params)                            # one-time packing

    final_pred, trade_exists = gat_forward(packed, x, edge_index, edge_attr)
    jax.block_until_ready((final_pred, trade_exists))

    assert final_pred.shape == (E, 1) and trade_exists.shape == (E, 1)
    assert bool(jnp.all(jnp.isfinite(final_pred))) and bool(jnp.all(jnp.isfinite(trade_exists)))
    print("KERNEL_OK")
</pallas_src>

<mosaic_0001>
module attributes {stable_mosaic.version = 11 : i64} {
  func.func @_gat_fused_kernel(%arg0: memref<16x8xf32, #tpu.memory_space<vmem>>, %arg1: memref<48x4xf32, #tpu.memory_space<vmem>>, %arg2: memref<48x1xi32, #tpu.memory_space<vmem>>, %arg3: memref<48x1xi32, #tpu.memory_space<vmem>>, %arg4: memref<1x48xi32, #tpu.memory_space<vmem>>, %arg5: memref<8x16xf32, #tpu.memory_space<vmem>>, %arg6: memref<16x32xf32, #tpu.memory_space<vmem>>, %arg7: memref<32x64xf32, #tpu.memory_space<vmem>>, %arg8: memref<3x16xf32, #tpu.memory_space<vmem>>, %arg9: memref<3x32xf32, #tpu.memory_space<vmem>>, %arg10: memref<3x64xf32, #tpu.memory_space<vmem>>, %arg11: memref<4x3xf32, #tpu.memory_space<vmem>>, %arg12: memref<64x64xf32, #tpu.memory_space<vmem>>, %arg13: memref<64x64xf32, #tpu.memory_space<vmem>>, %arg14: memref<4x64xf32, #tpu.memory_space<vmem>>, %arg15: memref<1x64xf32, #tpu.memory_space<vmem>>, %arg16: memref<64x32xf32, #tpu.memory_space<vmem>>, %arg17: memref<1x32xf32, #tpu.memory_space<vmem>>, %arg18: memref<32x32xf32, #tpu.memory_space<vmem>>, %arg19: memref<1x32xf32, #tpu.memory_space<vmem>>, %arg20: memref<32x2xf32, #tpu.memory_space<vmem>>, %arg21: memref<1x2xf32, #tpu.memory_space<vmem>>, %arg22: memref<48x2xf32, #tpu.memory_space<vmem>>) attributes {dimension_semantics = [], scalar_prefetch = 0 : i64, scratch_operands = 0 : i64, tpu.core_type = #tpu.core_type<tc>} {
    %c0 = arith.constant 0 : index
    %c0_0 = arith.constant 0 : index
    %0 = vector.load %arg0[%c0, %c0_0] : memref<16x8xf32, #tpu.memory_space<vmem>>, vector<16x8xf32>
    %c0_1 = arith.constant 0 : index
    %c0_2 = arith.constant 0 : index
    %1 = vector.load %arg1[%c0_1, %c0_2] : memref<48x4xf32, #tpu.memory_space<vmem>>, vector<48x4xf32>
    %2 = tpu.iota {dimensions = array<i32: 1>} : vector<48x16xi32>
    %c0_3 = arith.constant 0 : index
    %c0_4 = arith.constant 0 : index
    %3 = vector.load %arg2[%c0_3, %c0_4] : memref<48x1xi32, #tpu.memory_space<vmem>>, vector<48x1xi32>
    %4 = vector.broadcast %3 : vector<48x1xi32> to vector<48x16xi32>
    %5 = arith.cmpi eq, %2, %4 : vector<48x16xi32>
    %6 = arith.extui %5 : vector<48x16xi1> to vector<48x16xi32>
    %7 = arith.sitofp %6 : vector<48x16xi32> to vector<48x16xf32>
    %8 = tpu.iota {dimensions = array<i32: 1>} : vector<48x16xi32>
    %c0_5 = arith.constant 0 : index
    %c0_6 = arith.constant 0 : index
    %9 = vector.load %arg3[%c0_5, %c0_6] : memref<48x1xi32, #tpu.memory_space<vmem>>, vector<48x1xi32>
    %10 = vector.broadcast %9 : vector<48x1xi32> to vector<48x16xi32>
    %11 = arith.cmpi eq, %8, %10 : vector<48x16xi32>
    %12 = arith.extui %11 : vector<48x16xi1> to vector<48x16xi32>
    %13 = arith.sitofp %12 : vector<48x16xi32> to vector<48x16xf32>
    %14 = tpu.iota {dimensions = array<i32: 0>} : vector<16x48xi32>
    %c0_7 = arith.constant 0 : index
    %c0_8 = arith.constant 0 : index
    %15 = vector.load %arg4[%c0_7, %c0_8] : memref<1x48xi32, #tpu.memory_space<vmem>>, vector<1x48xi32>
    %16 = vector.broadcast %15 : vector<1x48xi32> to vector<16x48xi32>
    %17 = arith.cmpi eq, %14, %16 : vector<16x48xi32>
    %18 = arith.extui %17 : vector<16x48xi1> to vector<16x48xi32>
    %19 = arith.sitofp %18 : vector<16x48xi32> to vector<16x48xf32>
    %20 = tpu.iota {dimensions = array<i32: 0>} : vector<16x16xi32>
    %21 = tpu.iota {dimensions = array<i32: 1>} : vector<16x16xi32>
    %22 = arith.cmpi eq, %20, %21 : vector<16x16xi32>
    %23 = arith.extui %22 : vector<16x16xi1> to vector<16x16xi32>
    %24 = arith.sitofp %23 : vector<16x16xi32> to vector<16x16xf32>
    %cst = arith.constant dense<0.000000e+00> : vector<16x16xf32>
    %25 = tpu.matmul %19, %7, %cst {dimension_numbers = #tpu.dot_dimension_numbers<[1], [0], [0], [1], [0, 0, 1, 1], [], []>} : vector<16x48xf32>, vector<48x16xf32>, vector<16x16xf32> -> vector<16x16xf32>
    %26 = arith.addf %25, %24 : vector<16x16xf32>
    %cst_9 = arith.constant 5.000000e-01 : f32
    %27 = vector.broadcast %cst_9 : f32 to vector<16x16xf32>
    %28 = arith.cmpf ogt, %26, %27 : vector<16x16xf32>
    %cst_10 = arith.constant dense<0.000000e+00> : vector<16x4xf32>
    %29 = tpu.matmul %19, %1, %cst_10 {dimension_numbers = #tpu.dot_dimension_numbers<[1], [0], [0], [1], [0, 0, 1, 1], [], []>} : vector<16x48xf32>, vector<48x4xf32>, vector<16x4xf32> -> vector<16x4xf32>
    %cst_11 = arith.constant dense<0.000000e+00> : vector<16xf32>
    %30 = vector.multi_reduction <add>, %19, %cst_11 [1] : vector<16x48xf32> to vector<16xf32>
    %31 = vector.shape_cast %30 : vector<16xf32> to vector<16x1xf32>
    %cst_12 = arith.constant 1.000000e+00 : f32
    %32 = vector.broadcast %cst_12 : f32 to vector<16x1xf32>
    %33 = arith.maximumf %31, %32 : vector<16x1xf32>
    %34 = vector.broadcast %33 : vector<16x1xf32> to vector<16x4xf32>
    %35 = arith.divf %29, %34 : vector<16x4xf32>
    %c0_13 = arith.constant 0 : index
    %c0_14 = arith.constant 0 : index
    %36 = vector.load %arg11[%c0_13, %c0_14] : memref<4x3xf32, #tpu.memory_space<vmem>>, vector<4x3xf32>
    %cst_15 = arith.constant dense<0.000000e+00> : vector<48x3xf32>
    %37 = tpu.matmul %1, %36, %cst_15 {dimension_numbers = #tpu.dot_dimension_numbers<[1], [0], [0], [1], [0, 0, 1, 1], [], []>} : vector<48x4xf32>, vector<4x3xf32>, vector<48x3xf32> -> vector<48x3xf32>
    %c0_16 = arith.constant 0 : index
    %c0_17 = arith.constant 0 : index
    %38 = vector.load %arg11[%c0_16, %c0_17] : memref<4x3xf32, #tpu.memory_space<vmem>>, vector<4x3xf32>
    %cst_18 = arith.constant dense<0.000000e+00> : vector<16x3xf32>
    %39 = tpu.matmul %35, %38, %cst_18 {dimension_numbers = #tpu.dot_dimension_numbers<[1], [0], [0], [1], [0, 0, 1, 1], [], []>} : vector<16x4xf32>, vector<4x3xf32>, vector<16x3xf32> -> vector<16x3xf32>
    %c0_19 = arith.constant 0 : index
    %c0_20 = arith.constant 0 : index
    %40 = vector.load %arg8[%c0_19, %c0_20] : memref<3x16xf32, #tpu.memory_space<vmem>>, vector<3x16xf32>
    %41 = vector.extract_strided_slice %40 {offsets = [0, 0], sizes = [1, 16], strides = [1, 1]} : vector<3x16xf32> to vector<1x16xf32>
    %42 = vector.extract_strided_slice %40 {offsets = [1, 0], sizes = [1, 16], strides = [1, 1]} : vector<3x16xf32> to vector<1x16xf32>
    %43 = vector.extract_strided_slice %40 {offsets = [2, 0], sizes = [1, 16], strides = [1, 1]} : vector<3x16xf32> to vector<1x16xf32>
    %c0_21 = arith.constant 0 : index
    %c0_22 = arith.constant 0 : index
    %44 = vector.load %arg5[%c0_21, %c0_22] : memref<8x16xf32, #tpu.memory_space<vmem>>, vector<8x16xf32>
    %cst_23 = arith.constant dense<0.000000e+00> : vector<16x16xf32>
    %45 = tpu.matmul %0, %44, %cst_23 {dimension_numbers = #tpu.dot_dimension_numbers<[1], [0], [0], [1], [0, 0, 1, 1], [], []>} : vector<16x8xf32>, vector<8x16xf32>, vector<16x16xf32> -> vector<16x16xf32>
    %46 = vector.extract_strided_slice %37 {offsets = [0, 0], sizes = [48, 1], strides = [1, 1]} : vector<48x3xf32> to vector<48x1xf32>
    %47 = vector.broadcast %46 : vector<48x1xf32> to vector<48x16xf32>
    %48 = arith.mulf %7, %47 : vector<48x16xf32>
    %cst_24 = arith.constant dense<0.000000e+00> : vector<16x16xf32>
    %49 = tpu.matmul %19, %48, %cst_24 {dimension_numbers = #tpu.dot_dimension_numbers<[1], [0], [0], [1], [0, 0, 1, 1], [], []>} : vector<16x48xf32>, vector<48x16xf32>, vector<16x16xf32> -> vector<16x16xf32>
    %50 = vector.extract_strided_slice %39 {offsets = [0, 0], sizes = [16, 1], strides = [1, 1]} : vector<16x3xf32> to vector<16x1xf32>
    %51 = vector.broadcast %50 : vector<16x1xf32> to vector<16x16xf32>
    %52 = arith.mulf %24, %51 : vector<16x16xf32>
    %53 = arith.addf %49, %52 : vector<16x16xf32>
    %54 = vector.broadcast %42 : vector<1x16xf32> to vector<16x16xf32>
    %55 = arith.mulf %45, %54 : vector<16x16xf32>
    %cst_25 = arith.constant dense<0.000000e+00> : vector<16xf32>
    %56 = vector.multi_reduction <add>, %55, %cst_25 [1] : vector<16x16xf32> to vector<16xf32>
    %57 = vector.shape_cast %56 : vector<16xf32> to vector<16x1xf32>
    %cst_26 = arith.constant dense<0.000000e+00> : vector<1x16xf32>
    %58 = tpu.matmul %41, %45, %cst_26 {dimension_numbers = #tpu.dot_dimension_numbers<[1], [1], [0], [0], [0, 0, 1, 0], [], []>} : vector<1x16xf32>, vector<16x16xf32>, vector<1x16xf32> -> vector<1x16xf32>
    %59 = vector.broadcast %57 : vector<16x1xf32> to vector<16x16xf32>
    %60 = vector.broadcast %58 : vector<1x16xf32> to vector<16x16xf32>
    %61 = arith.addf %59, %60 : vector<16x16xf32>
    %62 = arith.addf %61, %53 : vector<16x16xf32>
    %cst_27 = arith.constant 0.000000e+00 : f32
    %63 = vector.broadcast %cst_27 : f32 to vector<16x16xf32>
    %64 = arith.cmpf oge, %62, %63 : vector<16x16xf32>
    %cst_28 = arith.constant 2.000000e-01 : f32
    %65 = vector.broadcast %cst_28 : f32 to vector<16x16xf32>
    %66 = arith.mulf %65, %62 : vector<16x16xf32>
    %67 = arith.select %64, %62, %66 : vector<16x16xi1>, vector<16x16xf32>
    %cst_29 = arith.constant -1.000000e+30 : f32
    %68 = vector.broadcast %cst_29 : f32 to vector<16x16xf32>
    %69 = arith.select %28, %67, %68 : vector<16x16xi1>, vector<16x16xf32>
    %cst_30 = arith.constant dense<0xFF800000> : vector<16xf32>
    %70 = vector.multi_reduction <maximumf>, %69, %cst_30 [1] : vector<16x16xf32> to vector<16xf32>
    %71 = vector.shape_cast %70 : vector<16xf32> to vector<16x1xf32>
    %72 = vector.broadcast %71 : vector<16x1xf32> to vector<16x16xf32>
    %73 = arith.subf %69, %72 : vector<16x16xf32>
    %74 = math.exp %73 : vector<16x16xf32>
    %cst_31 = arith.constant 0.000000e+00 : f32
    %75 = vector.broadcast %cst_31 : f32 to vector<16x16xf32>
    %76 = arith.select %28, %74, %75 : vector<16x16xi1>, vector<16x16xf32>
    %cst_32 = arith.constant dense<0.000000e+00> : vector<16xf32>
    %77 = vector.multi_reduction <add>, %76, %cst_32 [1] : vector<16x16xf32> to vector<16xf32>
    %78 = vector.shape_cast %77 : vector<16xf32> to vector<16x1xf32>
    %79 = tpu.reciprocal %78 {approx = true} : vector<16x1xf32> -> vector<16x1xf32>
    %80 = vector.broadcast %79 : vector<16x1xf32> to vector<16x16xf32>
    %81 = arith.mulf %76, %80 : vector<16x16xf32>
    %cst_33 = arith.constant dense<0.000000e+00> : vector<16x16xf32>
    %82 = tpu.matmul %81, %45, %cst_33 {dimension_numbers = #tpu.dot_dimension_numbers<[1], [0], [0], [1], [0, 0, 1, 1], [], []>} : vector<16x16xf32>, vector<16x16xf32>, vector<16x16xf32> -> vector<16x16xf32>
    %83 = vector.broadcast %43 : vector<1x16xf32> to vector<16x16xf32>
    %84 = arith.addf %82, %83 : vector<16x16xf32>
    %cst_34 = arith.constant 0.000000e+00 : f32
    %85 = vector.broadcast %cst_34 : f32 to vector<16x16xf32>
    %86 = arith.cmpf oge, %84, %85 : vector<16x16xf32>
    %cst_35 = arith.constant 0.00999999977 : f32
    %87 = vector.broadcast %cst_35 : f32 to vector<16x16xf32>
    %88 = arith.mulf %87, %84 : vector<16x16xf32>
    %89 = arith.select %86, %84, %88 : vector<16x16xi1>, vector<16x16xf32>
    %c0_36 = arith.constant 0 : index
    %c0_37 = arith.constant 0 : index
    %90 = vector.load %arg9[%c0_36, %c0_37] : memref<3x32xf32, #tpu.memory_space<vmem>>, vector<3x32xf32>
    %91 = vector.extract_strided_slice %90 {offsets = [0, 0], sizes = [1, 32], strides = [1, 1]} : vector<3x32xf32> to vector<1x32xf32>
    %92 = vector.extract_strided_slice %90 {offsets = [1, 0], sizes = [1, 32], strides = [1, 1]} : vector<3x32xf32> to vector<1x32xf32>
    %93 = vector.extract_strided_slice %90 {offsets = [2, 0], sizes = [1, 32], strides = [1, 1]} : vector<3x32xf32> to vector<1x32xf32>
    %c0_38 = arith.constant 0 : index
    %c0_39 = arith.constant 0 : index
    %94 = vector.load %arg6[%c0_38, %c0_39] : memref<16x32xf32, #tpu.memory_space<vmem>>, vector<16x32xf32>
    %cst_40 = arith.constant dense<0.000000e+00> : vector<16x32xf32>
    %95 = tpu.matmul %89, %94, %cst_40 {dimension_numbers = #tpu.dot_dimension_numbers<[1], [0], [0], [1], [0, 0, 1, 1], [], []>} : vector<16x16xf32>, vector<16x32xf32>, vector<16x32xf32> -> vector<16x32xf32>
    %96 = vector.extract_strided_slice %37 {offsets = [0, 1], sizes = [48, 1], strides = [1, 1]} : vector<48x3xf32> to vector<48x1xf32>
    %97 = vector.broadcast %96 : vector<48x1xf32> to vector<48x16xf32>
    %98 = arith.mulf %7, %97 : vector<48x16xf32>
    %cst_41 = arith.constant dense<0.000000e+00> : vector<16x16xf32>
    %99 = tpu.matmul %19, %98, %cst_41 {dimension_numbers = #tpu.dot_dimension_numbers<[1], [0], [0], [1], [0, 0, 1, 1], [], []>} : vector<16x48xf32>, vector<48x16xf32>, vector<16x16xf32> -> vector<16x16xf32>
    %100 = vector.extract_strided_slice %39 {offsets = [0, 1], sizes = [16, 1], strides = [1, 1]} : vector<16x3xf32> to vector<16x1xf32>
    %101 = vector.broadcast %100 : vector<16x1xf32> to vector<16x16xf32>
    %102 = arith.mulf %24, %101 : vector<16x16xf32>
    %103 = arith.addf %99, %102 : vector<16x16xf32>
    %104 = vector.broadcast %92 : vector<1x32xf32> to vector<16x32xf32>
    %105 = arith.mulf %95, %104 : vector<16x32xf32>
    %cst_42 = arith.constant dense<0.000000e+00> : vector<16xf32>
    %106 = vector.multi_reduction <add>, %105, %cst_42 [1] : vector<16x32xf32> to vector<16xf32>
    %107 = vector.shape_cast %106 : vector<16xf32> to vector<16x1xf32>
    %cst_43 = arith.constant dense<0.000000e+00> : vector<1x16xf32>
    %108 = tpu.matmul %91, %95, %cst_43 {dimension_numbers = #tpu.dot_dimension_numbers<[1], [1], [0], [0], [0, 0, 1, 0], [], []>} : vector<1x32xf32>, vector<16x32xf32>, vector<1x16xf32> -> vector<1x16xf32>
    %109 = vector.broadcast %107 : vector<16x1xf32> to vector<16x16xf32>
    %110 = vector.broadcast %108 : vector<1x16xf32> to vector<16x16xf32>
    %111 = arith.addf %109, %110 : vector<16x16xf32>
    %112 = arith.addf %111, %103 : vector<16x16xf32>
    %cst_44 = arith.constant 0.000000e+00 : f32
    %113 = vector.broadcast %cst_44 : f32 to vector<16x16xf32>
    %114 = arith.cmpf oge, %112, %113 : vector<16x16xf32>
    %cst_45 = arith.constant 2.000000e-01 : f32
    %115 = vector.broadcast %cst_45 : f32 to vector<16x16xf32>
    %116 = arith.mulf %115, %112 : vector<16x16xf32>
    %117 = arith.select %114, %112, %116 : vector<16x16xi1>, vector<16x16xf32>
    %cst_46 = arith.constant -1.000000e+30 : f32
    %118 = vector.broadcast %cst_46 : f32 to vector<16x16xf32>
    %119 = arith.select %28, %117, %118 : vector<16x16xi1>, vector<16x16xf32>
    %cst_47 = arith.constant dense<0xFF800000> : vector<16xf32>
    %120 = vector.multi_reduction <maximumf>, %119, %cst_47 [1] : vector<16x16xf32> to vector<16xf32>
    %121 = vector.shape_cast %120 : vector<16xf32> to vector<16x1xf32>
    %122 = vector.broadcast %121 : vector<16x1xf32> to vector<16x16xf32>
    %123 = arith.subf %119, %122 : vector<16x16xf32>
    %124 = math.exp %123 : vector<16x16xf32>
    %cst_48 = arith.constant 0.000000e+00 : f32
    %125 = vector.broadcast %cst_48 : f32 to vector<16x16xf32>
    %126 = arith.select %28, %124, %125 : vector<16x16xi1>, vector<16x16xf32>
    %cst_49 = arith.constant dense<0.000000e+00> : vector<16xf32>
    %127 = vector.multi_reduction <add>, %126, %cst_49 [1] : vector<16x16xf32> to vector<16xf32>
    %128 = vector.shape_cast %127 : vector<16xf32> to vector<16x1xf32>
    %129 = tpu.reciprocal %128 {approx = true} : vector<16x1xf32> -> vector<16x1xf32>
    %130 = vector.broadcast %129 : vector<16x1xf32> to vector<16x16xf32>
    %131 = arith.mulf %126, %130 : vector<16x16xf32>
    %cst_50 = arith.constant dense<0.000000e+00> : vector<16x32xf32>
    %132 = tpu.matmul %131, %95, %cst_50 {dimension_numbers = #tpu.dot_dimension_numbers<[1], [0], [0], [1], [0, 0, 1, 1], [], []>} : vector<16x16xf32>, vector<16x32xf32>, vector<16x32xf32> -> vector<16x32xf32>
    %133 = vector.broadcast %93 : vector<1x32xf32> to vector<16x32xf32>
    %134 = arith.addf %132, %133 : vector<16x32xf32>
    %cst_51 = arith.constant 0.000000e+00 : f32
    %135 = vector.broadcast %cst_51 : f32 to vector<16x32xf32>
    %136 = arith.cmpf oge, %134, %135 : vector<16x32xf32>
    %cst_52 = arith.constant 0.00999999977 : f32
    %137 = vector.broadcast %cst_52 : f32 to vector<16x32xf32>
    %138 = arith.mulf %137, %134 : vector<16x32xf32>
    %139 = arith.select %136, %134, %138 : vector<16x32xi1>, vector<16x32xf32>
    %c0_53 = arith.constant 0 : index
    %c0_54 = arith.constant 0 : index
    %140 = vector.load %arg10[%c0_53, %c0_54] : memref<3x64xf32, #tpu.memory_space<vmem>>, vector<3x64xf32>
    %141 = vector.extract_strided_slice %140 {offsets = [0, 0], sizes = [1, 64], strides = [1, 1]} : vector<3x64xf32> to vector<1x64xf32>
    %142 = vector.extract_strided_slice %140 {offsets = [1, 0], sizes = [1, 64], strides = [1, 1]} : vector<3x64xf32> to vector<1x64xf32>
    %143 = vector.extract_strided_slice %140 {offsets = [2, 0], sizes = [1, 64], strides = [1, 1]} : vector<3x64xf32> to vector<1x64xf32>
    %c0_55 = arith.constant 0 : index
    %c0_56 = arith.constant 0 : index
    %144 = vector.load %arg7[%c0_55, %c0_56] : memref<32x64xf32, #tpu.memory_space<vmem>>, vector<32x64xf32>
    %cst_57 = arith.constant dense<0.000000e+00> : vector<16x64xf32>
    %145 = tpu.matmul %139, %144, %cst_57 {dimension_numbers = #tpu.dot_dimension_numbers<[1], [0], [0], [1], [0, 0, 1, 1], [], []>} : vector<16x32xf32>, vector<32x64xf32>, vector<16x64xf32> -> vector<16x64xf32>
    %146 = vector.extract_strided_slice %37 {offsets = [0, 2], sizes = [48, 1], strides = [1, 1]} : vector<48x3xf32> to vector<48x1xf32>
    %147 = vector.broadcast %146 : vector<48x1xf32> to vector<48x16xf32>
    %148 = arith.mulf %7, %147 : vector<48x16xf32>
    %cst_58 = arith.constant dense<0.000000e+00> : vector<16x16xf32>
    %149 = tpu.matmul %19, %148, %cst_58 {dimension_numbers = #tpu.dot_dimension_numbers<[1], [0], [0], [1], [0, 0, 1, 1], [], []>} : vector<16x48xf32>, vector<48x16xf32>, vector<16x16xf32> -> vector<16x16xf32>
    %150 = vector.extract_strided_slice %39 {offsets = [0, 2], sizes = [16, 1], strides = [1, 1]} : vector<16x3xf32> to vector<16x1xf32>
    %151 = vector.broadcast %150 : vector<16x1xf32> to vector<16x16xf32>
    %152 = arith.mulf %24, %151 : vector<16x16xf32>
    %153 = arith.addf %149, %152 : vector<16x16xf32>
    %154 = vector.broadcast %142 : vector<1x64xf32> to vector<16x64xf32>
    %155 = arith.mulf %145, %154 : vector<16x64xf32>
    %cst_59 = arith.constant dense<0.000000e+00> : vector<16xf32>
    %156 = vector.multi_reduction <add>, %155, %cst_59 [1] : vector<16x64xf32> to vector<16xf32>
    %157 = vector.shape_cast %156 : vector<16xf32> to vector<16x1xf32>
    %cst_60 = arith.constant dense<0.000000e+00> : vector<1x16xf32>
    %158 = tpu.matmul %141, %145, %cst_60 {dimension_numbers = #tpu.dot_dimension_numbers<[1], [1], [0], [0], [0, 0, 1, 0], [], []>} : vector<1x64xf32>, vector<16x64xf32>, vector<1x16xf32> -> vector<1x16xf32>
    %159 = vector.broadcast %157 : vector<16x1xf32> to vector<16x16xf32>
    %160 = vector.broadcast %158 : vector<1x16xf32> to vector<16x16xf32>
    %161 = arith.addf %159, %160 : vector<16x16xf32>
    %162 = arith.addf %161, %153 : vector<16x16xf32>
    %cst_61 = arith.constant 0.000000e+00 : f32
    %163 = vector.broadcast %cst_61 : f32 to vector<16x16xf32>
    %164 = arith.cmpf oge, %162, %163 : vector<16x16xf32>
    %cst_62 = arith.constant 2.000000e-01 : f32
    %165 = vector.broadcast %cst_62 : f32 to vector<16x16xf32>
    %166 = arith.mulf %165, %162 : vector<16x16xf32>
    %167 = arith.select %164, %162, %166 : vector<16x16xi1>, vector<16x16xf32>
    %cst_63 = arith.constant -1.000000e+30 : f32
    %168 = vector.broadcast %cst_63 : f32 to vector<16x16xf32>
    %169 = arith.select %28, %167, %168 : vector<16x16xi1>, vector<16x16xf32>
    %cst_64 = arith.constant dense<0xFF800000> : vector<16xf32>
    %170 = vector.multi_reduction <maximumf>, %169, %cst_64 [1] : vector<16x16xf32> to vector<16xf32>
    %171 = vector.shape_cast %170 : vector<16xf32> to vector<16x1xf32>
    %172 = vector.broadcast %171 : vector<16x1xf32> to vector<16x16xf32>
    %173 = arith.subf %169, %172 : vector<16x16xf32>
    %174 = math.exp %173 : vector<16x16xf32>
    %cst_65 = arith.constant 0.000000e+00 : f32
    %175 = vector.broadcast %cst_65 : f32 to vector<16x16xf32>
    %176 = arith.select %28, %174, %175 : vector<16x16xi1>, vector<16x16xf32>
    %cst_66 = arith.constant dense<0.000000e+00> : vector<16xf32>
    %177 = vector.multi_reduction <add>, %176, %cst_66 [1] : vector<16x16xf32> to vector<16xf32>
    %178 = vector.shape_cast %177 : vector<16xf32> to vector<16x1xf32>
    %179 = tpu.reciprocal %178 {approx = true} : vector<16x1xf32> -> vector<16x1xf32>
    %180 = vector.broadcast %179 : vector<16x1xf32> to vector<16x16xf32>
    %181 = arith.mulf %176, %180 : vector<16x16xf32>
    %cst_67 = arith.constant dense<0.000000e+00> : vector<16x64xf32>
    %182 = tpu.matmul %181, %145, %cst_67 {dimension_numbers = #tpu.dot_dimension_numbers<[1], [0], [0], [1], [0, 0, 1, 1], [], []>} : vector<16x16xf32>, vector<16x64xf32>, vector<16x64xf32> -> vector<16x64xf32>
    %183 = vector.broadcast %143 : vector<1x64xf32> to vector<16x64xf32>
    %184 = arith.addf %182, %183 : vector<16x64xf32>
    %cst_68 = arith.constant 0.000000e+00 : f32
    %185 = vector.broadcast %cst_68 : f32 to vector<16x64xf32>
    %186 = arith.cmpf oge, %184, %185 : vector<16x64xf32>
    %cst_69 = arith.constant 0.00999999977 : f32
    %187 = vector.broadcast %cst_69 : f32 to vector<16x64xf32>
    %188 = arith.mulf %187, %184 : vector<16x64xf32>
    %189 = arith.select %186, %184, %188 : vector<16x64xi1>, vector<16x64xf32>
    %c0_70 = arith.constant 0 : index
    %c0_71 = arith.constant 0 : index
    %190 = vector.load %arg12[%c0_70, %c0_71] : memref<64x64xf32, #tpu.memory_space<vmem>>, vector<64x64xf32>
    %cst_72 = arith.constant dense<0.000000e+00> : vector<16x64xf32>
    %191 = tpu.matmul %189, %190, %cst_72 {dimension_numbers = #tpu.dot_dimension_numbers<[1], [0], [0], [1], [0, 0, 1, 1], [], []>} : vector<16x64xf32>, vector<64x64xf32>, vector<16x64xf32> -> vector<16x64xf32>
    %c0_73 = arith.constant 0 : index
    %c0_74 = arith.constant 0 : index
    %192 = vector.load %arg13[%c0_73, %c0_74] : memref<64x64xf32, #tpu.memory_space<vmem>>, vector<64x64xf32>
    %cst_75 = arith.constant dense<0.000000e+00> : vector<16x64xf32>
    %193 = tpu.matmul %189, %192, %cst_75 {dimension_numbers = #tpu.dot_dimension_numbers<[1], [0], [0], [1], [0, 0, 1, 1], [], []>} : vector<16x64xf32>, vector<64x64xf32>, vector<16x64xf32> -> vector<16x64xf32>
    %cst_76 = arith.constant dense<0.000000e+00> : vector<48x64xf32>
    %194 = tpu.matmul %7, %191, %cst_76 {dimension_numbers = #tpu.dot_dimension_numbers<[1], [0], [0], [1], [0, 0, 1, 1], [], []>} : vector<48x16xf32>, vector<16x64xf32>, vector<48x64xf32> -> vector<48x64xf32>
    %cst_77 = arith.constant dense<0.000000e+00> : vector<48x64xf32>
    %195 = tpu.matmul %13, %193, %cst_77 {dimension_numbers = #tpu.dot_dimension_numbers<[1], [0], [0], [1], [0, 0, 1, 1], [], []>} : vector<48x16xf32>, vector<16x64xf32>, vector<48x64xf32> -> vector<48x64xf32>
    %196 = arith.addf %194, %195 : vector<48x64xf32>
    %c0_78 = arith.constant 0 : index
    %c0_79 = arith.constant 0 : index
    %197 = vector.load %arg14[%c0_78, %c0_79] : memref<4x64xf32, #tpu.memory_space<vmem>>, vector<4x64xf32>
    %cst_80 = arith.constant dense<0.000000e+00> : vector<48x64xf32>
    %198 = tpu.matmul %1, %197, %cst_80 {dimension_numbers = #tpu.dot_dimension_numbers<[1], [0], [0], [1], [0, 0, 1, 1], [], []>} : vector<48x4xf32>, vector<4x64xf32>, vector<48x64xf32> -> vector<48x64xf32>
    %199 = arith.addf %196, %198 : vector<48x64xf32>
    %c0_81 = arith.constant 0 : index
    %c0_82 = arith.constant 0 : index
    %200 = vector.load %arg15[%c0_81, %c0_82] : memref<1x64xf32, #tpu.memory_space<vmem>>, vector<1x64xf32>
    %201 = vector.broadcast %200 : vector<1x64xf32> to vector<48x64xf32>
    %202 = arith.addf %199, %201 : vector<48x64xf32>
    %cst_83 = arith.constant 0.000000e+00 : f32
    %203 = vector.broadcast %cst_83 : f32 to vector<48x64xf32>
    %204 = arith.cmpf oge, %202, %203 : vector<48x64xf32>
    %cst_84 = arith.constant 0.00999999977 : f32
    %205 = vector.broadcast %cst_84 : f32 to vector<48x64xf32>
    %206 = arith.mulf %205, %202 : vector<48x64xf32>
    %207 = arith.select %204, %202, %206 : vector<48x64xi1>, vector<48x64xf32>
    %c0_85 = arith.constant 0 : index
    %c0_86 = arith.constant 0 : index
    %208 = vector.load %arg16[%c0_85, %c0_86] : memref<64x32xf32, #tpu.memory_space<vmem>>, vector<64x32xf32>
    %cst_87 = arith.constant dense<0.000000e+00> : vector<48x32xf32>
    %209 = tpu.matmul %207, %208, %cst_87 {dimension_numbers = #tpu.dot_dimension_numbers<[1], [0], [0], [1], [0, 0, 1, 1], [], []>} : vector<48x64xf32>, vector<64x32xf32>, vector<48x32xf32> -> vector<48x32xf32>
    %c0_88 = arith.constant 0 : index
    %c0_89 = arith.constant 0 : index
    %210 = vector.load %arg17[%c0_88, %c0_89] : memref<1x32xf32, #tpu.memory_space<vmem>>, vector<1x32xf32>
    %211 = vector.broadcast %210 : vector<1x32xf32> to vector<48x32xf32>
    %212 = arith.addf %209, %211 : vector<48x32xf32>
    %cst_90 = arith.constant 0.000000e+00 : f32
    %213 = vector.broadcast %cst_90 : f32 to vector<48x32xf32>
    %214 = arith.cmpf oge, %212, %213 : vector<48x32xf32>
    %cst_91 = arith.constant 0.00999999977 : f32
    %215 = vector.broadcast %cst_91 : f32 to vector<48x32xf32>
    %216 = arith.mulf %215, %212 : vector<48x32xf32>
    %217 = arith.select %214, %212, %216 : vector<48x32xi1>, vector<48x32xf32>
    %c0_92 = arith.constant 0 : index
    %c0_93 = arith.constant 0 : index
    %218 = vector.load %arg18[%c0_92, %c0_93] : memref<32x32xf32, #tpu.memory_space<vmem>>, vector<32x32xf32>
    %cst_94 = arith.constant dense<0.000000e+00> : vector<48x32xf32>
    %219 = tpu.matmul %217, %218, %cst_94 {dimension_numbers = #tpu.dot_dimension_numbers<[1], [0], [0], [1], [0, 0, 1, 1], [], []>} : vector<48x32xf32>, vector<32x32xf32>, vector<48x32xf32> -> vector<48x32xf32>
    %c0_95 = arith.constant 0 : index
    %c0_96 = arith.constant 0 : index
    %220 = vector.load %arg19[%c0_95, %c0_96] : memref<1x32xf32, #tpu.memory_space<vmem>>, vector<1x32xf32>
    %221 = vector.broadcast %220 : vector<1x32xf32> to vector<48x32xf32>
    %222 = arith.addf %219, %221 : vector<48x32xf32>
    %cst_97 = arith.constant 0.000000e+00 : f32
    %223 = vector.broadcast %cst_97 : f32 to vector<48x32xf32>
    %224 = arith.cmpf oge, %222, %223 : vector<48x32xf32>
    %cst_98 = arith.constant 0.00999999977 : f32
    %225 = vector.broadcast %cst_98 : f32 to vector<48x32xf32>
    %226 = arith.mulf %225, %222 : vector<48x32xf32>
    %227 = arith.select %224, %222, %226 : vector<48x32xi1>, vector<48x32xf32>
    %c0_99 = arith.constant 0 : index
    %c0_100 = arith.constant 0 : index
    %228 = vector.load %arg20[%c0_99, %c0_100] : memref<32x2xf32, #tpu.memory_space<vmem>>, vector<32x2xf32>
    %cst_101 = arith.constant dense<0.000000e+00> : vector<48x2xf32>
    %229 = tpu.matmul %227, %228, %cst_101 {dimension_numbers = #tpu.dot_dimension_numbers<[1], [0], [0], [1], [0, 0, 1, 1], [], []>} : vector<48x32xf32>, vector<32x2xf32>, vector<48x2xf32> -> vector<48x2xf32>
    %c0_102 = arith.constant 0 : index
    %c0_103 = arith.constant 0 : index
    %230 = vector.load %arg21[%c0_102, %c0_103] : memref<1x2xf32, #tpu.memory_space<vmem>>, vector<1x2xf32>
    %231 = vector.broadcast %230 : vector<1x2xf32> to vector<48x2xf32>
    %232 = arith.addf %229, %231 : vector<48x2xf32>
    %233 = vector.extract_strided_slice %232 {offsets = [0, 0], sizes = [48, 1], strides = [1, 1]} : vector<48x2xf32> to vector<48x1xf32>
    %cst_104 = arith.constant 0.000000e+00 : f32
    %234 = vector.broadcast %cst_104 : f32 to vector<48x1xf32>
    %235 = arith.subf %234, %233 : vector<48x1xf32>
    %236 = math.exp %235 : vector<48x1xf32>
    %cst_105 = arith.constant 1.000000e+00 : f32
    %237 = vector.broadcast %cst_105 : f32 to vector<48x1xf32>
    %238 = arith.addf %237, %236 : vector<48x1xf32>
    %239 = tpu.reciprocal %238 {approx = true} : vector<48x1xf32> -> vector<48x1xf32>
    %240 = vector.extract_strided_slice %232 {offsets = [0, 1], sizes = [48, 1], strides = [1, 1]} : vector<48x2xf32> to vector<48x1xf32>
    %241 = arith.mulf %239, %240 : vector<48x1xf32>
    %242 = tpu.concatenate %241, %239 in 1 : vector<48x1xf32>, vector<48x1xf32> -> vector<48x2xf32>
    %c0_106 = arith.constant 0 : index
    %c0_107 = arith.constant 0 : index
    %243 = vector.load %arg22[%c0_106, %c0_107] : memref<48x2xf32, #tpu.memory_space<vmem>>, vector<48x2xf32>
    tpu.vector_store %arg22[%c0_106, %c0_107], %242 {strides = array<i32>} : memref<48x2xf32, #tpu.memory_space<vmem>>, vector<48x2xf32>,
    return
  }
}

</mosaic_0001>

<bundles_post_ra>
// kernel: tpu_custom_call.1
= control target key start
LH: loop header
LB: loop body
LE: loop exit
PB: predicated region body
PF: predicated region fallthrough
CT: control target
= control target key end

     0   :  { %vm295_vm0 = vcmask 1043456   ;;  %vm276_vm1 = vcmask 31744   ;;  %v1754_v0 = vmov 0   ;;  %v79_v14 = vlaneseq  ;;  %s2492_s11 = inlined_call_operand.vmem [shape: f32[4,3], index: 11, kind: input, shape index: {}]   ;;  %s2493_s2 = inlined_call_operand.vmem [shape: s32[48,1], index: 2, kind: input, shape index: {}]   ;;  %s2494_s1 = inlined_call_operand.vmem [shape: f32[48,4], index: 1, kind: input, shape index: {}]   ;;  %s2495_s4 = inlined_call_operand.vmem [shape: s32[1,48], index: 4, kind: input, shape index: {}]   ;;  %s2496_s5 = inlined_call_operand.vmem [shape: f32[8,16], index: 5, kind: input, shape index: {}]   ;;  %s2497_s0 = inlined_call_operand.vmem [shape: f32[16,8], index: 0, kind: input, shape index: {}]   ;;  %s2498_s8 = inlined_call_operand.vmem [shape: f32[3,16], index: 8, kind: input, shape index: {}]   ;;  %s2499_s6 = inlined_call_operand.vmem [shape: f32[16,32], index: 6, kind: input, shape index: {}]   ;;  %s2500_s9 = inlined_call_operand.vmem [shape: f32[3,32], index: 9, kind: input, shape index: {}]   ;;  %s2501_s7 = inlined_call_operand.vmem [shape: f32[32,64], index: 7, kind: input, shape index: {}]   ;;  %s2502_s10 = inlined_call_operand.vmem [shape: f32[3,64], index: 10, kind: input, shape index: {}]   ;;  %s2503_s12 = inlined_call_operand.vmem [shape: f32[64,64], index: 12, kind: input, shape index: {}]   ;;  %s2504_s13 = inlined_call_operand.vmem [shape: f32[64,64], index: 13, kind: input, shape index: {}]   ;;  %s2505_s3 = inlined_call_operand.vmem [shape: s32[48,1], index: 3, kind: input, shape index: {}]   ;;  %s2506_s14 = inlined_call_operand.vmem [shape: f32[4,64], index: 14, kind: input, shape index: {}]   ;;  %s2507_s15 = inlined_call_operand.vmem [shape: f32[1,64], index: 15, kind: input, shape index: {}]   ;;  %s2508_s17 = inlined_call_operand.vmem [shape: f32[1,32], index: 17, kind: input, shape index: {}]   ;;  %s2509_s16 = inlined_call_operand.vmem [shape: f32[64,32], index: 16, kind: input, shape index: {}]   ;;  %s2510_s18 = inlined_call_operand.vmem [shape: f32[32,32], index: 18, kind: input, shape index: {}]   ;;  %s2511_s19 = inlined_call_operand.vmem [shape: f32[1,32], index: 19, kind: input, shape index: {}]   ;;  %s2512_s20 = inlined_call_operand.vmem [shape: f32[32,2], index: 20, kind: input, shape index: {}]   ;;  %s2513_s21 = inlined_call_operand.vmem [shape: f32[1,2], index: 21, kind: input, shape index: {}]   ;;  %s2514_s22 = inlined_call_operand.vmem [shape: f32[48,2], index: 22, kind: output, shape index: {}]  }
   0x1   :  { %2518 = sst [smem:[#allocation2_spill]] %s2492_s11  ;;  %1679 = vset.pattern.permute.xlu1 %v1754_v0  ;;  %1678 = vset.pattern.permute.xlu0 %v1754_v0  ;;  %v1755_v17 = vmov 0.0   ;;  %vm182_vm3 = vcmask 392192   ;;  %v1756_v26 = vmov 1.0  }
   0x2   :  { %2519 = sst [smem:[#allocation3_spill]] %s2493_s2  ;;  %1680 = vset.pattern.permute.xlu2 %v1754_v0  ;;  %v1933_v15 = vshrl.u32 %v79_v14, 7  ;;  %v1953_v23 = vand.u32 127, %v79_v14 }
   0x3   :  { %2520 = sst [smem:[#allocation4_spill]] %s2494_s1 }
   0x4   :  { %2521 = sst [smem:[#allocation5_spill]] %s2495_s4  ;;  %v1945_v20 = vadd.s32 8, %v1933_v15 }
   0x5   :  { %2522 = sst [smem:[#allocation6_spill]] %s2496_s5 }
   0x6   :  { %2523 = sst [smem:[#allocation7_spill]] %s2497_s0 }
   0x7   :  { %2524 = sst [smem:[#allocation8_spill]] %s2498_s8 }
   0x8   :  { %s2525_s29 = sld [smem:[#allocation2_spill]] }
   0x9   :  { %s2526_s11 = sld [smem:[#allocation3_spill]] }
   0xa   :  { %s2527_s8 = sld [smem:[#allocation4_spill]] }
   0xb   :  { %s2529_s0 = sld [smem:[#allocation6_spill]] }
   0xc   :  { %s2530_s24 = sld [smem:[#allocation7_spill]] }
   0xd   :  { %s2531_s4 = sld [smem:[#allocation8_spill]] }
   0xe   :  { %v275_v1 = vld [vmem:[%s2525_s29] sm:$0xf]  ;;  %s2528_s29 = sld [smem:[#allocation5_spill]] }
   0xf   :  { %v86_v2 = vld [vmem:[%s2526_s11 + $0x28] sm:$0xff]  ;;  %v84_v3 = vld [vmem:[%s2526_s11 + $0x18] sm:$0xff]  ;;  %1670 = vmatpush.msk.msra.mxu3 %vm295_vm0, %v275_v1  ;;  %1592 = vmatpush.msk.msra.mxu2 %vm295_vm0, %v275_v1  ;;  %v85_v7 = vld [vmem:[%s2526_s11 + $0x20] sm:$0xff] }
  0x10   :  { %103 = vperm.xlu0 %1678, %v86_v2   ;;  %v1891_v4 = vld [vmem:[%s2527_s8 + $0x18] sm:$0xff]  ;;  %97 = vperm.xlu1 %1679, %v84_v3   ;;  %v1898_v5 = vld [vmem:[%s2527_s8] sm:$0xff]  ;;  %v82_v6 = vld [vmem:[%s2526_s11 + $0x8] sm:$0xff] }
  0x11   :  { %1596 = vmatmul.msk.f32.vlgmr.msra.gmra.mxu3 %vm276_vm1, %v1891_v4  ;;  %1593 = vmatmul.msk.f32.vlgmr.msra.gmra.mxu2 %vm276_vm1, %v1898_v5  ;;  %v83_v8 = vld [vmem:[%s2526_s11 + $0x10] sm:$0xff]  ;;  %v77_v9 = vld [vmem:[%s2527_s8 + $0x20] sm:$0xff]  ;;  %v74_v10 = vld [vmem:[%s2527_s8 + $0x8] sm:$0xff] }
  0x12   :  { %91 = vperm.xlu2 %1680, %v82_v6   ;;  %1599 = vmatpush.msk.msrb.mxu3 %vm295_vm0, %v275_v1  ;;  %v81_v11 = vld [vmem:[%s2526_s11] sm:$0xff]  ;;  %v78_v12 = vld [vmem:[%s2527_s8 + $0x28] sm:$0xff]  ;;  %v75_v13 = vld [vmem:[%s2527_s8 + $0x10] sm:$0xff] }
  0x13   :  { %v364_v52 = vld [vmem:[%s2529_s0] sm:$0xff]  ;;  %s1759_s0 = smov 127  }
  0x14   :  { %v1691_v16 = vld [vmem:[%s2528_s29] ss:$0 sm:$0xff]  ;;  %387 = vmatpush.msra.mxu3 %v364_v52 }
  0x15   :  { %vm170_vm2 = vcmp.eq.s32.totalorder %v1933_v15, %v1691_v16  ;;  %vm171_vm4 = vcmp.eq.s32.totalorder %v1945_v20, %v1691_v16 }
  0x16   :  { %v1940_v18 = vsel %vm170_vm2, 1.0, %v1755_v17  ;;  %v1949_v21 = vsel %vm171_vm4, 1.0, %v1755_v17 }
  0x17   :  { %v237_v19 = vsel %vm182_vm3, %v1940_v18, 0.0  ;;  %v240_v22 = vsel %vm182_vm3, %v1949_v21, 0.0 }
  0x18   :  { %100 = vperm.xlu0 %1678, %v85_v7   ;;  %94 = vperm.xlu1 %1679, %v83_v8  }
  0x19   :  { %1597 = vmatmul.msk.f32.gmra.mxu3 %vm276_vm1, %v77_v9  ;;  %1594 = vmatmul.msk.f32.gmra.mxu2 %vm276_vm1, %v74_v10 }
  0x1a   :  { %88 = vperm.xlu2 %1680, %v81_v11  }
  0x21   :  { %1598 = vmatmul.msk.f32.gmra.mxu3 %vm276_vm1, %v78_v12  ;;  %1595 = vmatmul.msk.f32.gmra.mxu2 %vm276_vm1, %v75_v13 }
  0x42   :  { %238 = vadd.xlane.f32.xlu0 %v237_v19  ;;  %241 = vadd.xlane.f32.xlu1 %v240_v22 }
  0x6c   :  { %v1958_v27 = vpop.permute.xlu2 %91 }
  0x6d   :  { %vm106_vm9 = vcmp.eq.s32.totalorder %v1953_v23, %v1958_v27 }
  0x6e   :  { %v2040_v57 = vsel %vm106_vm9, 1.0, %v1755_v17 }
  0x74   :  { %v1967_v30 = vpop.permute.xlu2 %88 }
  0x75   :  { %vm105_vm10 = vcmp.eq.s32.totalorder %v1953_v23, %v1967_v30  ;;  %v72_v30 = vld [vmem:[%s2530_s24 + $0x8] sm:$0xff] }
  0x76   :  { %v2049_v62 = vsel %vm105_vm10, 1.0, %v1755_v17 }
  0x82   :  { %v104_v24 = vpop.permute.xlu0 %103  ;;  %v98_v25 = vpop.permute.xlu1 %97 }
  0x83   :  { %vm110_vm5 = vcmp.eq.s32.totalorder %v1953_v23, %v104_v24  ;;  %vm108_vm7 = vcmp.eq.s32.totalorder %v1953_v23, %v98_v25 }
  0x84   :  { %1582 = vmatpush.msk.msra.mxu1 %vm110_vm5, %v1756_v26  ;;  %v2012_v42 = vsel %vm110_vm5, 1.0, %v1755_v17  ;;  %v2024_v49 = vsel %vm108_vm7, 1.0, %v1755_v17 }
  0x8a   :  { %v101_v28 = vpop.permute.xlu0 %100  ;;  %v95_v29 = vpop.permute.xlu1 %94 }
  0x8b   :  { %vm109_vm6 = vcmp.eq.s32.totalorder %v1953_v23, %v101_v28  ;;  %vm107_vm8 = vcmp.eq.s32.totalorder %v1953_v23, %v95_v29  ;;  %v71_v29 = vld [vmem:[%s2530_s24] sm:$0xff] }
  0x8c   :  { %1583 = vmatpush.msk.msra.mxu1 %vm109_vm6, %v1756_v26  ;;  %v2018_v46 = vsel %vm109_vm6, 1.0, %v1755_v17  ;;  %v2033_v53 = vsel %vm107_vm8, 1.0, %v1755_v17  ;;  %vm365_vm6 = vcmask 64512  }
  0x8e   :  { %1584 = vmatpush.msk.msra.mxu1 %vm108_vm7, %v1756_v26  ;;  %vm469_vm7 = vcmask 130048  }
  0x90   :  { %1585 = vmatpush.msk.msra.mxu1 %vm107_vm8, %v1756_v26  ;;  %vm176_vm8 = vcmp.eq.s32.totalorder %v1933_v15, %v1953_v23 }
  0x92   :  { %1586 = vmatpush.msk.msra.mxu1 %vm106_vm9, %v1756_v26  ;;  %vm177_vm9 = vcmp.eq.s32.totalorder %v1945_v20, %v1953_v23 }
  0x94   :  { %1587 = vmatpush.msk.msra.mxu1 %vm105_vm10, %v1756_v26  ;;  %v1981_v31 = vpop.f32.mrf.mxu3  ;;  %v1986_v32 = vpop.f32.mrf.mxu2 }
  0x95   :  { %1588 = vmatmul.msk.f32.vlgmr.msra.gmra.mxu1 %vm182_vm3, %v1940_v18  ;;  %412 = vperm.xlu2 %1680, %v1981_v31  }
  0x96   :  { %224 = vmatpush.msrb.mxu1 %v78_v12 }
  0x98   :  { %225 = vmatpush.msrb.mxu1 %v77_v9 }
  0x9a   :  { %226 = vmatpush.msrb.mxu1 %v1891_v4 }
  0x9c   :  { %v1989_v33 = vpop.f32.mrf.mxu3  ;;  %227 = vmatpush.msrb.mxu1 %v75_v13  ;;  %v1995_v34 = vpop.f32.mrf.mxu2 }
  0x9d   :  { %1589 = vmatmul.msk.f32.gmra.mxu1 %vm182_vm3, %v1949_v21  ;;  %417 = vperm.xlu2 %1680, %v1989_v33  }
  0x9e   :  { %228 = vmatpush.msrb.mxu1 %v74_v10 }
  0xa0   :  { %229 = vmatpush.msrb.mxu1 %v1898_v5 }
  0xa4   :  { %v2000_v35 = vpop.f32.mrf.mxu3  ;;  %v2005_v36 = vpop.f32.mrf.mxu2 }
  0xa5   :  { %402 = vperm.xlu2 %1680, %v1995_v34   ;;  %1590 = vmatmul.msk.f32.vlgmr.msrb.gmra.mxu1 %vm182_vm3, %v1940_v18 }
  0xad   :  { %422 = vperm.xlu2 %1680, %v2000_v35   ;;  %1591 = vmatmul.msk.f32.gmra.mxu1 %vm182_vm3, %v1949_v21 }
  0xb5   :  { %407 = vperm.xlu2 %1680, %v2005_v36   ;;  %v239_v40 = vpop.xlane.xlu0 %238  ;;  %v242_v44 = vpop.xlane.xlu1 %241 }
  0xb6   :  { %v243_v41 = vmax.f32 %v239_v40, 1.0  ;;  %v244_v48 = vmax.f32 %v242_v44, 1.0 }
  0xb8   :  { %1696 = vrcp.f32 %v243_v41  ;;  %vm250_vm11 = vweird.f32 %v243_v41  ;;  %v256_v5 = vand.u32 2147483648, %v243_v41  ;;  %v254_v7 = vand.u32 2147483647, %v243_v41 }
  0xb9   :  { %1698 = vrcp.f32 %v244_v48  ;;  %vm265_vm15 = vweird.f32 %v244_v48  ;;  %v271_v14 = vand.u32 2147483648, %v244_v48  ;;  %v269_v22 = vand.u32 2147483647, %v244_v48 }
  0xba   :  { %v257_v9 = vor.u32 1.1754944e-38, %v256_v5  ;;  %vm255_vm14 = vcmp.eq.f32.partialorder %v254_v7, 8.507059e+37 }
  0xbb   :  { %v272_v24 = vor.u32 1.1754944e-38, %v271_v14  ;;  %vm270_vm5 = vcmp.eq.f32.partialorder %v269_v22, 8.507059e+37 }
  0xbd   :  { %397 = vperm.xlu2 %1680, %v1986_v32  }
  0xbe   :  { %v1697_v50 = vpop.eup %1696 }
  0xbf   :  { %v246_v55 = vmul.f32 %v1697_v50, %v243_v41  ;;  %v1699_v61 = vpop.eup %1698  ;;  %vm251_vm12 = vweird.f32 %v1697_v50 }
  0xc0   :  { %v261_v2 = vmul.f32 %v1699_v61, %v244_v48  ;;  %vm252_vm13 = vmor %vm250_vm11, %vm251_vm12  ;;  %vm266_vm2 = vweird.f32 %v1699_v61 }
  0xc1   :  { %v247_v60 = vsub.f32 1.0, %v246_v55  ;;  %vm267_vm4 = vmor %vm265_vm15, %vm266_vm2  ;;  %vm676_vm2 = vcmask 261120  }
  0xc2   :  { %v262_v8 = vsub.f32 1.0, %v261_v2 }
  0xc3   :  { %v248_v1 = vmul.f32 %v1697_v50, %v247_v60 }
  0xc4   :  { %v263_v11 = vmul.f32 %v1699_v61, %v262_v8 }
  0xc5   :  { %v249_v6 = vadd.f32 %v1697_v50, %v248_v1 }
  0xc6   :  { %v264_v19 = vadd.f32 %v1699_v61, %v263_v11 }
  0xc7   :  { %v253_v10 = vsel %vm252_vm13, %v1697_v50, %v249_v6  ;;  %v1757_v50 = vmov 1  }
  0xc8   :  { %v258_v13 = vsel %vm255_vm14, %v257_v9, %v253_v10  ;;  %v268_v25 = vsel %vm267_vm4, %v1699_v61, %v264_v19  ;;  %1681 = vset.pattern.permute.xlu1 %v1757_v50 }
  0xc9   :  { %v273_v27 = vsel %vm270_vm5, %v272_v24, %v268_v25 }
  0xef   :  { %v413_v37 = vpop.permute.xlu2 %412 }
  0xf0   :  { %v428_v51 = vmul.f32 %v2024_v49, %v413_v37 }
  0xf7   :  { %v418_v38 = vpop.permute.xlu2 %417 }
  0xf8   :  { %v429_v47 = vmul.f32 %v2018_v46, %v418_v38 }
  0xff   :  { %v403_v39 = vpop.permute.xlu2 %402 }
 0x100   :  { %v426_v58 = vmul.f32 %v2040_v57, %v403_v39  ;;  %v2075_v39 = vld [vmem:[%s2531_s4] sm:$0x7] }
 0x101   :  { %v466_v40 = vperm.slane %v2075_v39, 1 }
 0x107   :  { %v423_v43 = vpop.permute.xlu2 %422 }
 0x108   :  { %v430_v45 = vmul.f32 %v2012_v42, %v423_v43 }
 0x10a   :  { %453 = vmatpush.msra.mxu0 %v430_v45 }
 0x10c   :  { %454 = vmatpush.msra.mxu0 %v429_v47 }
 0x10e   :  { %455 = vmatpush.msra.mxu0 %v428_v51 }
 0x10f   :  { %v408_v54 = vpop.permute.xlu2 %407 }
 0x110   :  { %v427_v56 = vmul.f32 %v2033_v53, %v408_v54 }
 0x112   :  { %v2043_v59 = vpop.f32.mrf.mxu1  ;;  %456 = vmatpush.msra.mxu0 %v427_v56  ;;  %v2089_v56 = vsel %vm176_vm8, 1.0, %v1755_v17  ;;  %vm885_vm8 = vcmask 523264  }
 0x113   :  { %v2098_v7 = vadd.f32 %v2089_v56, %v2043_v59 }
 0x114   :  { %457 = vmatpush.msra.mxu0 %v426_v58  ;;  %v2092_v58 = vsel %vm177_vm9, 1.0, %v1755_v17 }
 0x115   :  { %vm212_vm12 = vcmp.gt.f32.partialorder %v2098_v7, 0.5  ;;  %v1000_v7 = vld [vmem:[%s2503_s12 + $0x30] sm:$0xff] }
 0x117   :  { %v398_v63 = vpop.permute.xlu2 %397 }
 0x118   :  { %v425_v3 = vmul.f32 %v2049_v62, %v398_v63 }
 0x11a   :  { %v2052_v4 = vpop.f32.mrf.mxu1  ;;  %458 = vmatpush.msra.mxu0 %v425_v3 }
 0x11b   :  { %1604 = vmatmul.msk.f32.vlgmr.msra.gmra.mxu0 %vm182_vm3, %v1940_v18  ;;  %v2102_v8 = vadd.f32 %v2092_v58, %v2052_v4 }
 0x11d   :  { %vm213_vm13 = vcmp.gt.f32.partialorder %v2102_v8, 0.5  ;;  %v1037_v8 = vld [vmem:[%s2504_s13 + $0x30] sm:$0xff] }
 0x122   :  { %v231_v12 = vpop.f32.mrf.mxu1 }
 0x123   :  { %v259_v16 = vmul.f32 %v258_v13, %v231_v12  ;;  %1605 = vmatmul.msk.f32.gmra.mxu0 %vm182_vm3, %v1949_v21 }
 0x125   :  { %1600 = vmatmul.msk.f32.vlgmr.msrb.gmra.mxu3 %vm276_vm1, %v259_v16 }
 0x12a   :  { %v234_v26 = vpop.f32.mrf.mxu1 }
 0x12b   :  { %v274_v28 = vmul.f32 %v273_v27, %v234_v26 }
 0x12d   :  { %1601 = vmatmul.msk.f32.gmra.mxu3 %vm276_vm1, %v274_v28 }
 0x135   :  { %1602 = vmatmul.msk.f32.vlgmr.msra.gmra.mxu3 %vm365_vm6, %v71_v29 }
 0x13d   :  { %1603 = vmatmul.msk.f32.gmra.mxu3 %vm365_vm6, %v72_v30 }
 0x198   :  { %v460_v51 = vpop.f32.mrf.mxu0 }
 0x1a0   :  { %v463_v63 = vpop.f32.mrf.mxu0 }
 0x1a8   :  { %v2066_v37 = vpop.f32.mrf.mxu3 }
 0x1a9   :  { %433 = vperm.xlu0 %1678, %v2066_v37  }
 0x1b0   :  { %v2069_v38 = vpop.f32.mrf.mxu3 }
 0x1b1   :  { %438 = vperm.xlu2 %1680, %v2069_v38   ;;  %1683 = vset.pattern.permute.xlu0 %v1757_v50 }
 0x1b8   :  { %v389_v41 = vpop.f32.mrf.mxu3 }
 0x1b9   :  { %v467_v43 = vmul.f32 %v466_v40, %v389_v41  ;;  %1682 = vset.pattern.permute.xlu2 %v1757_v50 }
 0x1bb   :  { %v470_v44 = vsel %vm469_vm7, %v467_v43, 0.0 }
 0x1bc   :  { %471 = vadd.xlane.f32.xlu1 %v470_v44 }
 0x1c0   :  { %v392_v45 = vpop.f32.mrf.mxu3 }
 0x1c1   :  { %1606 = vmatpush.xpose.msk.msra.mxu1 %vm469_vm7, %v392_v45  ;;  %563 = vmatpush.msrb.mxu3 %v392_v45  ;;  %v468_v47 = vmul.f32 %v466_v40, %v392_v45 }
 0x1c3   :  { %564 = vmatpush.msrb.mxu3 %v389_v41  ;;  %v473_v48 = vsel %vm469_vm7, %v468_v47, 0.0 }
 0x1c4   :  { %474 = vadd.xlane.f32.xlu1 %v473_v48 }
 0x1c5   :  { %1607 = vmatpush.xpose.msk.msra.mxu1 %vm469_vm7, %v389_v41 }
 0x1c8   :  { %1608 = vmatmul.msk.f32.vlgmr.msra.gmra.mxu1 %vm469_vm7, %v2075_v39 }
 0x20b   :  { %v439_v54 = vpop.permute.xlu2 %438 }
 0x20c   :  { %v442_v60 = vmul.f32 %v2092_v58, %v439_v54 }
 0x20e   :  { %v464_v15 = vadd.f32 %v463_v63, %v442_v60 }
 0x21b   :  { %v434_v55 = vpop.permute.xlu0 %433 }
 0x21c   :  { %v441_v61 = vmul.f32 %v2089_v56, %v434_v55 }
 0x21e   :  { %v461_v5 = vadd.f32 %v460_v51, %v441_v61 }
 0x22f   :  { %v472_v52 = vpop.xlane.xlu1 %471 }
 0x237   :  { %v475_v3 = vpop.xlane.xlu1 %474 }
 0x245   :  { %v502_v1 = vpop.f32.mrf.mxu1 }
 0x246   :  { %v505_v2 = vperm.slane %v502_v1, 0 }
 0x248   :  { %v506_v6 = vadd.f32 %v505_v2, %v472_v52  ;;  %v507_v20 = vadd.f32 %v505_v2, %v475_v3 }
 0x24a   :  { %v508_v9 = vadd.f32 %v506_v6, %v461_v5  ;;  %v509_v10 = vadd.f32 %v507_v20, %v464_v15 }
 0x24c   :  { %vm510_vm10 = vcmp.ge.f32.partialorder %v508_v9, 0.0  ;;  %v512_v11 = vmul.f32 0.2, %v508_v9  ;;  %vm511_vm11 = vcmp.ge.f32.partialorder %v509_v10, 0.0  ;;  %v513_v12 = vmul.f32 0.2, %v509_v10 }
 0x24e   :  { %v514_v13 = vsel %vm510_vm10, %v508_v9, %v512_v11  ;;  %v515_v14 = vsel %vm511_vm11, %v509_v10, %v513_v12  ;;  %v580_v9 = vld [vmem:[%s2499_s6 + $0x8] sm:$0xff]  ;;  %v579_v10 = vld [vmem:[%s2499_s6] sm:$0xff]  ;;  %v542_v11 = vperm.slane %v2075_v39, 2 }
 0x24f   :  { %v516_v59 = vsel %vm212_vm12, %v514_v13, -1e+30  ;;  %v517_v16 = vsel %vm213_vm13, %v515_v14, -1e+30  ;;  %601 = vmatpush.msrb.mxu1 %v580_v9 }
 0x250   :  { %v518_v4 = vsel %vm469_vm7, %v516_v59, -inf  ;;  %v521_v19 = vsel %vm469_vm7, %v517_v16, -inf }
 0x251   :  { %519 = vmax.xlane.f32.xlu2 %v518_v4  ;;  %522 = vmax.xlane.f32.xlu1 %v521_v19 }
 0x252   :  { %602 = vmatpush.msrb.mxu1 %v579_v10 }
 0x269   :  { %627 = vperm.xlu2 %1682, %v1989_v33  }
 0x271   :  { %641 = vperm.xlu2 %1682, %v2066_v37  }
 0x279   :  { %645 = vperm.xlu2 %1682, %v2069_v38  }
 0x2c4   :  { %v520_v22 = vpop.xlane.xlu2 %519  ;;  %v523_v24 = vpop.xlane.xlu1 %522 }
 0x2c5   :  { %v524_v25 = vsub.f32 %v516_v59, %v520_v22  ;;  %v525_v26 = vsub.f32 %v517_v16, %v523_v24  ;;  %v2150_v24 = vld [vmem:[%s2500_s9] sm:$0x7] }
 0x2c6   :  { %v673_v39 = vperm.slane %v2150_v24, 1 }
 0x2c7   :  { %v526_v27 = vmul.f32 1.442695, %v524_v25  ;;  %v528_v28 = vmul.f32 1.442695, %v525_v26 }
 0x2c9   :  { %1700 = vpow2.f32 %v526_v27 }
 0x2ca   :  { %1702 = vpow2.f32 %v528_v28 }
 0x2cc   :  { %v628_v54 = vpop.permute.xlu2 %627 }
 0x2cd   :  { %v638_v61 = vmul.f32 %v2018_v46, %v628_v54 }
 0x2cf   :  { %v1701_v29 = vpop.eup %1700 }
 0x2d0   :  { %v1703_v30 = vpop.eup %1702  ;;  %v530_v40 = vsel %vm212_vm12, %v1701_v29, 0.0 }
 0x2d1   :  { %v532_v41 = vsel %vm469_vm7, %v530_v40, 0.0  ;;  %v531_v43 = vsel %vm213_vm13, %v1703_v30, 0.0 }
 0x2d2   :  { %533 = vadd.xlane.f32.xlu0 %v532_v41  ;;  %v535_v44 = vsel %vm469_vm7, %v531_v43, 0.0 }
 0x2d3   :  { %536 = vadd.xlane.f32.xlu1 %v535_v44 }
 0x2d4   :  { %v642_v41 = vpop.permute.xlu2 %641 }
 0x2dc   :  { %v646_v44 = vpop.permute.xlu2 %645 }
 0x2e6   :  { %619 = vperm.xlu0 %1683, %v2005_v36  }
 0x2ec   :  { %631 = vperm.xlu1 %1681, %v2000_v35  }
 0x2f4   :  { %623 = vperm.xlu1 %1681, %v1981_v31  }
 0x2fc   :  { %615 = vperm.xlu1 %1681, %v1995_v34  }
 0x304   :  { %611 = vperm.xlu1 %1681, %v1986_v32  }
 0x345   :  { %v534_v45 = vpop.xlane.xlu0 %533 }
 0x346   :  { %1704 = vrcp.f32 %v534_v45  ;;  %v537_v47 = vpop.xlane.xlu1 %536 }
 0x347   :  { %1706 = vrcp.f32 %v537_v47 }
 0x34c   :  { %v1705_v48 = vpop.eup %1704 }
 0x34d   :  { %v540_v50 = vmul.f32 %v1705_v48, %v530_v40  ;;  %v1707_v51 = vpop.eup %1706  ;;  %v1758_v40 = vmov 2   ;;  %v648_v48 = vmul.f32 %v2089_v56, %v642_v41 }
 0x34e   :  { %v541_v52 = vmul.f32 %v1707_v51, %v531_v43  ;;  %1685 = vset.pattern.permute.xlu0 %v1758_v40  ;;  %1686 = vset.pattern.permute.xlu2 %v1758_v40 }
 0x34f   :  { %1609 = vmatmul.msk.f32.vlgmr.msrb.gmra.mxu3 %vm469_vm7, %v540_v50  ;;  %1684 = vset.pattern.permute.xlu1 %v1758_v40  ;;  %v649_v50 = vmul.f32 %v2092_v58, %v646_v44 }
 0x357   :  { %1610 = vmatmul.msk.f32.gmra.mxu3 %vm469_vm7, %v541_v52 }
 0x358   :  { %v620_v63 = vpop.permute.xlu0 %619 }
 0x359   :  { %v636_v3 = vmul.f32 %v2033_v53, %v620_v63 }
 0x35e   :  { %v632_v55 = vpop.permute.xlu1 %631 }
 0x35f   :  { %v639_v60 = vmul.f32 %v2012_v42, %v632_v55 }
 0x361   :  { %660 = vmatpush.msrb.mxu0 %v639_v60 }
 0x363   :  { %661 = vmatpush.msrb.mxu0 %v638_v61 }
 0x366   :  { %v624_v1 = vpop.permute.xlu1 %623 }
 0x367   :  { %v637_v2 = vmul.f32 %v2024_v49, %v624_v1 }
 0x369   :  { %662 = vmatpush.msrb.mxu0 %v637_v2 }
 0x36b   :  { %663 = vmatpush.msrb.mxu0 %v636_v3 }
 0x36e   :  { %v616_v15 = vpop.permute.xlu1 %615 }
 0x36f   :  { %v635_v5 = vmul.f32 %v2040_v57, %v616_v15 }
 0x371   :  { %664 = vmatpush.msrb.mxu0 %v635_v5 }
 0x376   :  { %v612_v6 = vpop.permute.xlu1 %611 }
 0x377   :  { %v634_v20 = vmul.f32 %v2049_v62, %v612_v6 }
 0x379   :  { %665 = vmatpush.msrb.mxu0 %v634_v20 }
 0x37a   :  { %1613 = vmatmul.msk.f32.vlgmr.msrb.gmra.mxu0 %vm182_vm3, %v1940_v18 }
 0x382   :  { %1614 = vmatmul.msk.f32.gmra.mxu0 %vm182_vm3, %v1949_v21 }
 0x3d2   :  { %v566_v12 = vpop.f32.mrf.mxu3 }
 0x3d3   :  { %v567_v13 = vadd.f32 %v566_v12, %v542_v11 }
 0x3d5   :  { %vm572_vm14 = vcmp.ge.f32.partialorder %v567_v13, 0.0  ;;  %v574_v14 = vmul.f32 0.01, %v567_v13 }
 0x3d7   :  { %v576_v59 = vsel %vm572_vm14, %v567_v13, %v574_v14 }
 0x3d8   :  { %1611 = vmatmul.msk.f32.vlgmr.msrb.gmra.mxu1 %vm469_vm7, %v576_v59 }
 0x3da   :  { %v569_v16 = vpop.f32.mrf.mxu3 }
 0x3db   :  { %v570_v4 = vadd.f32 %v569_v16, %v542_v11 }
 0x3dd   :  { %v575_v19 = vmul.f32 0.01, %v570_v4  ;;  %vm573_vm15 = vcmp.ge.f32.partialorder %v570_v4, 0.0 }
 0x3df   :  { %v577_v22 = vsel %vm573_vm15, %v570_v4, %v575_v19 }
 0x3e0   :  { %1612 = vmatmul.msk.f32.gmra.mxu1 %vm469_vm7, %v577_v22 }
 0x3f7   :  { %v667_v43 = vpop.f32.mrf.mxu0 }
 0x3f8   :  { %v668_v55 = vadd.f32 %v667_v43, %v648_v48 }
 0x3ff   :  { %v670_v45 = vpop.f32.mrf.mxu0 }
 0x400   :  { %v671_v60 = vadd.f32 %v670_v45, %v649_v50 }
 0x455   :  { %v604_v25 = vpop.f32.mrf.mxu1 }
 0x456   :  { %v674_v26 = vmul.f32 %v673_v39, %v604_v25 }
 0x458   :  { %v677_v27 = vsel %vm676_vm2, %v674_v26, 0.0 }
 0x459   :  { %678 = vadd.xlane.f32.xlu1 %v677_v27 }
 0x45d   :  { %v607_v28 = vpop.f32.mrf.mxu1 }
 0x45e   :  { %1615 = vmatpush.xpose.msk.msrb.mxu2 %vm676_vm2, %v607_v28  ;;  %770 = vmatpush.msra.mxu3 %v607_v28  ;;  %v675_v29 = vmul.f32 %v673_v39, %v607_v28 }
 0x460   :  { %771 = vmatpush.msra.mxu3 %v604_v25  ;;  %v680_v30 = vsel %vm676_vm2, %v675_v29, 0.0 }
 0x461   :  { %681 = vadd.xlane.f32.xlu2 %v680_v30 }
 0x462   :  { %1616 = vmatpush.xpose.msk.msrb.mxu2 %vm676_vm2, %v604_v25 }
 0x465   :  { %1617 = vmatmul.msk.f32.vlgmr.msrb.gmra.mxu2 %vm676_vm2, %v2150_v24 }
 0x4cc   :  { %v679_v52 = vpop.xlane.xlu1 %678 }
 0x4d4   :  { %v682_v54 = vpop.xlane.xlu2 %681 }
 0x4e8   :  { %v709_v47 = vpop.f32.mrf.mxu2 }
 0x4e9   :  { %v712_v51 = vperm.slane %v709_v47, 0 }
 0x4eb   :  { %v713_v61 = vadd.f32 %v712_v51, %v679_v52  ;;  %v714_v63 = vadd.f32 %v712_v51, %v682_v54  ;;  %v788_v51 = vld [vmem:[%s2501_s7 + $0x10] sm:$0xff]  ;;  %v787_v52 = vld [vmem:[%s2501_s7 + $0x8] sm:$0xff]  ;;  %v786_v54 = vld [vmem:[%s2501_s7] sm:$0xff] }
 0x4ed   :  { %v715_v1 = vadd.f32 %v713_v61, %v668_v55  ;;  %v716_v2 = vadd.f32 %v714_v63, %v671_v60 }
 0x4ef   :  { %vm718_vm4 = vcmp.ge.f32.partialorder %v716_v2, 0.0  ;;  %v720_v3 = vmul.f32 0.2, %v716_v2  ;;  %vm717_vm5 = vcmp.ge.f32.partialorder %v715_v1, 0.0  ;;  %v719_v15 = vmul.f32 0.2, %v715_v1 }
 0x4f1   :  { %v722_v5 = vsel %vm718_vm4, %v716_v2, %v720_v3  ;;  %v721_v6 = vsel %vm717_vm5, %v715_v1, %v719_v15  ;;  %v2217_v15 = vld [vmem:[%s2502_s10] sm:$0x7] }
 0x4f2   :  { %v724_v20 = vsel %vm213_vm13, %v722_v5, -1e+30  ;;  %v723_v9 = vsel %vm212_vm12, %v721_v6, -1e+30 }
 0x4f3   :  { %v728_v10 = vsel %vm469_vm7, %v724_v20, -inf  ;;  %v725_v11 = vsel %vm469_vm7, %v723_v9, -inf }
 0x4f4   :  { %729 = vmax.xlane.f32.xlu1 %v728_v10  ;;  %726 = vmax.xlane.f32.xlu0 %v725_v11 }
 0x508   :  { %836 = vperm.xlu0 %1685, %v1989_v33  }
 0x510   :  { %854 = vperm.xlu0 %1685, %v2069_v38  }
 0x518   :  { %1688 = vset.pattern.permute.xlu0 %v1754_v0 }
 0x567   :  { %v727_v12 = vpop.xlane.xlu0 %726  ;;  %v730_v13 = vpop.xlane.xlu1 %729 }
 0x568   :  { %v731_v14 = vsub.f32 %v723_v9, %v727_v12  ;;  %v732_v59 = vsub.f32 %v724_v20, %v730_v13 }
 0x56a   :  { %v733_v16 = vmul.f32 1.442695, %v731_v14  ;;  %v735_v4 = vmul.f32 1.442695, %v732_v59 }
 0x56c   :  { %1708 = vpow2.f32 %v733_v16 }
 0x56d   :  { %1710 = vpow2.f32 %v735_v4 }
 0x572   :  { %v1709_v19 = vpop.eup %1708 }
 0x573   :  { %v1711_v22 = vpop.eup %1710  ;;  %v737_v39 = vsel %vm212_vm12, %v1709_v19, 0.0 }
 0x574   :  { %v739_v25 = vsel %vm469_vm7, %v737_v39, 0.0  ;;  %v738_v33 = vsel %vm213_vm13, %v1711_v22, 0.0 }
 0x575   :  { %740 = vadd.xlane.f32.xlu1 %v739_v25  ;;  %v742_v38 = vsel %vm469_vm7, %v738_v33, 0.0 }
 0x576   :  { %743 = vadd.xlane.f32.xlu2 %v742_v38 }
 0x58e   :  { %832 = vperm.xlu2 %1686, %v1981_v31   ;;  %840 = vperm.xlu1 %1684, %v2000_v35  }
 0x596   :  { %824 = vperm.xlu2 %1686, %v1995_v34   ;;  %828 = vperm.xlu1 %1684, %v2005_v36  }
 0x59e   :  { %850 = vperm.xlu2 %1686, %v2066_v37   ;;  %820 = vperm.xlu1 %1684, %v1986_v32   ;;  %v789_v32 = vld [vmem:[%s2501_s7 + $0x18] sm:$0xff]  ;;  %v837_v37 = vpop.permute.xlu0 %836 }
 0x59f   :  { %808 = vmatpush.msra.mxu1 %v789_v32  ;;  %v847_v30 = vmul.f32 %v2018_v46, %v837_v37 }
 0x5a1   :  { %809 = vmatpush.msra.mxu1 %v788_v51 }
 0x5a3   :  { %810 = vmatpush.msra.mxu1 %v787_v52 }
 0x5a5   :  { %811 = vmatpush.msra.mxu1 %v786_v54 }
 0x5a6   :  { %1689 = vset.pattern.permute.xlu1 %v1754_v0  ;;  %1687 = vset.pattern.permute.xlu2 %v1754_v0  ;;  %v855_v14 = vpop.permute.xlu0 %854 }
 0x5a7   :  { %v858_v4 = vmul.f32 %v2092_v58, %v855_v14  ;;  %v994_v14 = vld [vmem:[%s2503_s12] sm:$0xff] }
 0x5e8   :  { %v741_v26 = vpop.xlane.xlu1 %740 }
 0x5e9   :  { %1712 = vrcp.f32 %v741_v26  ;;  %v744_v27 = vpop.xlane.xlu2 %743 }
 0x5ea   :  { %1714 = vrcp.f32 %v744_v27 }
 0x5ef   :  { %v1713_v28 = vpop.eup %1712 }
 0x5f0   :  { %v747_v31 = vmul.f32 %v1713_v28, %v737_v39  ;;  %v1715_v35 = vpop.eup %1714 }
 0x5f1   :  { %v748_v34 = vmul.f32 %v1715_v35, %v738_v33  ;;  %v833_v36 = vpop.permute.xlu2 %832 }
 0x5f2   :  { %1618 = vmatmul.msk.f32.vlgmr.msra.gmra.mxu3 %vm469_vm7, %v747_v31  ;;  %v846_v41 = vmul.f32 %v2024_v49, %v833_v36 }
 0x5f9   :  { %v825_v43 = vpop.permute.xlu2 %824 }
 0x5fa   :  { %1619 = vmatmul.msk.f32.gmra.mxu3 %vm469_vm7, %v748_v34  ;;  %v844_v47 = vmul.f32 %v2040_v57, %v825_v43 }
 0x600   :  { %v841_v0 = vpop.permute.xlu1 %840 }
 0x601   :  { %v848_v29 = vmul.f32 %v2012_v42, %v841_v0  ;;  %v851_v13 = vpop.permute.xlu2 %850 }
 0x602   :  { %v857_v19 = vmul.f32 %v2089_v56, %v851_v13  ;;  %v1032_v13 = vld [vmem:[%s2504_s13 + $0x8] sm:$0xff] }
 0x603   :  { %869 = vmatpush.msra.mxu0 %v848_v29 }
 0x605   :  { %870 = vmatpush.msra.mxu0 %v847_v30 }
 0x607   :  { %871 = vmatpush.msra.mxu0 %v846_v41 }
 0x608   :  { %v829_v44 = vpop.permute.xlu1 %828 }
 0x609   :  { %v845_v45 = vmul.f32 %v2033_v53, %v829_v44 }
 0x60b   :  { %872 = vmatpush.msra.mxu0 %v845_v45 }
 0x60d   :  { %873 = vmatpush.msra.mxu0 %v844_v47 }
 0x610   :  { %v821_v48 = vpop.permute.xlu1 %820 }
 0x611   :  { %v843_v50 = vmul.f32 %v2049_v62, %v821_v48 }
 0x613   :  { %874 = vmatpush.msra.mxu0 %v843_v50 }
 0x614   :  { %1622 = vmatmul.msk.f32.vlgmr.msra.gmra.mxu0 %vm182_vm3, %v1940_v18  ;;  %v749_v18 = vperm.slane %v2150_v24, 2  ;;  %v882_v24 = vperm.slane %v2217_v15, 1 }
 0x61c   :  { %1623 = vmatmul.msk.f32.gmra.mxu0 %vm182_vm3, %v1949_v21 }
 0x675   :  { %v773_v55 = vpop.f32.mrf.mxu3 }
 0x676   :  { %v774_v60 = vadd.f32 %v773_v55, %v749_v18  ;;  %v1038_v55 = vld [vmem:[%s2504_s13 + $0x38] sm:$0xff] }
 0x677   :  { %1047 = vmatpush.msrb.mxu1 %v1038_v55  ;;  %v1247_v55 = vld [vmem:[%s2509_s16 + $0x30] sm:$0xff] }
 0x678   :  { %vm779_vm3 = vcmp.ge.f32.partialorder %v774_v60, 0.0  ;;  %v781_v21 = vmul.f32 0.01, %v774_v60 }
 0x679   :  { %1048 = vmatpush.msrb.mxu1 %v1037_v8  ;;  %v1241_v8 = vld [vmem:[%s2509_s16] sm:$0xff] }
 0x67a   :  { %v783_v61 = vsel %vm779_vm3, %v774_v60, %v781_v21  ;;  %v999_v60 = vld [vmem:[%s2503_s12 + $0x28] sm:$0xff] }
 0x67b   :  { %1620 = vmatmul.msk.f32.vlgmr.msra.gmra.mxu1 %vm676_vm2, %v783_v61  ;;  %v1036_v21 = vld [vmem:[%s2504_s13 + $0x28] sm:$0xff]  ;;  %v998_v61 = vld [vmem:[%s2503_s12 + $0x20] sm:$0xff] }
 0x67c   :  { %1049 = vmatpush.msrb.mxu1 %v1036_v21 }
 0x67d   :  { %v776_v63 = vpop.f32.mrf.mxu3 }
 0x67e   :  { %v777_v1 = vadd.f32 %v776_v63, %v749_v18  ;;  %v1001_v18 = vld [vmem:[%s2503_s12 + $0x38] sm:$0xff]  ;;  %v1035_v63 = vld [vmem:[%s2504_s13 + $0x20] sm:$0xff] }
 0x67f   :  { %1016 = vmatpush.msrb.mxu3 %v1001_v18  ;;  %1050 = vmatpush.msrb.mxu1 %v1035_v63 }
 0x680   :  { %v782_v2 = vmul.f32 0.01, %v777_v1  ;;  %vm780_vm6 = vcmp.ge.f32.partialorder %v777_v1, 0.0 }
 0x681   :  { %1017 = vmatpush.msrb.mxu3 %v1000_v7  ;;  %v1242_v7 = vld [vmem:[%s2509_s16 + $0x8] sm:$0xff] }
 0x682   :  { %v784_v3 = vsel %vm780_vm6, %v777_v1, %v782_v2  ;;  %v997_v1 = vld [vmem:[%s2503_s12 + $0x18] sm:$0xff] }
 0x683   :  { %1621 = vmatmul.msk.f32.gmra.mxu1 %vm676_vm2, %v784_v3  ;;  %1018 = vmatpush.msrb.mxu3 %v999_v60  ;;  %v1034_v2 = vld [vmem:[%s2504_s13 + $0x18] sm:$0xff] }
 0x684   :  { %1051 = vmatpush.msrb.mxu1 %v1034_v2 }
 0x685   :  { %1019 = vmatpush.msrb.mxu3 %v998_v61 }
 0x687   :  { %1020 = vmatpush.msrb.mxu3 %v997_v1 }
 0x691   :  { %v876_v12 = vpop.f32.mrf.mxu0 }
 0x692   :  { %v877_v33 = vadd.f32 %v876_v12, %v857_v19  ;;  %v995_v12 = vld [vmem:[%s2503_s12 + $0x8] sm:$0xff]  ;;  %v123_v19 = vld [vmem:[%s2505_s3] sm:$0xff] }
 0x699   :  { %v879_v59 = vpop.f32.mrf.mxu0 }
 0x69a   :  { %v880_v38 = vadd.f32 %v879_v59, %v858_v4  ;;  %v1031_v59 = vld [vmem:[%s2504_s13] sm:$0xff]  ;;  %v125_v4 = vld [vmem:[%s2505_s3 + $0x10] sm:$0xff] }
 0x6f8   :  { %v813_v5 = vpop.f32.mrf.mxu1 }
 0x6f9   :  { %v883_v6 = vmul.f32 %v882_v24, %v813_v5 }
 0x6fb   :  { %v886_v20 = vsel %vm885_vm8, %v883_v6, 0.0 }
 0x6fc   :  { %887 = vadd.xlane.f32.xlu1 %v886_v20 }
 0x700   :  { %v816_v9 = vpop.f32.mrf.mxu1 }
 0x701   :  { %1624 = vmatpush.xpose.msk.msra.mxu2 %vm885_vm8, %v816_v9  ;;  %v884_v10 = vmul.f32 %v882_v24, %v816_v9 }
 0x703   :  { %v889_v11 = vsel %vm885_vm8, %v884_v10, 0.0  ;;  %v996_v10 = vld [vmem:[%s2503_s12 + $0x10] sm:$0xff] }
 0x704   :  { %890 = vadd.xlane.f32.xlu2 %v889_v11  ;;  %v1033_v11 = vld [vmem:[%s2504_s13 + $0x10] sm:$0xff]  ;;  %1021 = vmatpush.msrb.mxu3 %v996_v10 }
 0x705   :  { %1625 = vmatpush.xpose.msk.msra.mxu2 %vm885_vm8, %v813_v5  ;;  %1052 = vmatpush.msrb.mxu1 %v1033_v11 }
 0x706   :  { %1022 = vmatpush.msrb.mxu3 %v995_v12 }
 0x707   :  { %1053 = vmatpush.msrb.mxu1 %v1032_v13 }
 0x708   :  { %1626 = vmatmul.msk.f32.vlgmr.msra.gmra.mxu2 %vm885_vm8, %v2217_v15  ;;  %1023 = vmatpush.msrb.mxu3 %v994_v14 }
 0x709   :  { %979 = vmatpush.msrb.mxu2 %v816_v9  ;;  %1054 = vmatpush.msrb.mxu1 %v1031_v59 }
 0x70b   :  { %980 = vmatpush.msrb.mxu2 %v813_v5 }
 0x76f   :  { %v888_v39 = vpop.xlane.xlu1 %887 }
 0x777   :  { %v891_v25 = vpop.xlane.xlu2 %890 }
 0x78b   :  { %v918_v16 = vpop.f32.mrf.mxu2 }
 0x78c   :  { %v921_v22 = vperm.slane %v918_v16, 0  ;;  %v124_v16 = vld [vmem:[%s2505_s3 + $0x8] sm:$0xff] }
 0x78e   :  { %v922_v26 = vadd.f32 %v921_v22, %v888_v39  ;;  %v923_v27 = vadd.f32 %v921_v22, %v891_v25  ;;  %v127_v22 = vld [vmem:[%s2505_s3 + $0x20] sm:$0xff]  ;;  %v126_v39 = vld [vmem:[%s2505_s3 + $0x18] sm:$0xff]  ;;  %v958_v25 = vperm.slane %v2217_v15, 2 }
 0x78f   :  { %v1168_v15 = vld [vmem:[%s2506_s14] sm:$0xf] }
 0x790   :  { %v924_v28 = vadd.f32 %v922_v26, %v877_v33  ;;  %v925_v31 = vadd.f32 %v923_v27, %v880_v38  ;;  %v128_v33 = vld [vmem:[%s2505_s3 + $0x28] sm:$0xff]  ;;  %1645 = vmatpush.msk.msra.mxu3 %vm295_vm0, %v1168_v15 }
 0x792   :  { %vm927_vm9 = vcmp.ge.f32.partialorder %v925_v31, 0.0  ;;  %v929_v35 = vmul.f32 0.2, %v925_v31  ;;  %vm926_vm10 = vcmp.ge.f32.partialorder %v924_v28, 0.0  ;;  %v928_v34 = vmul.f32 0.2, %v924_v28 }
 0x794   :  { %v931_v32 = vsel %vm927_vm9, %v925_v31, %v929_v35  ;;  %v930_v36 = vsel %vm926_vm10, %v924_v28, %v928_v34 }
 0x795   :  { %v933_v58 = vsel %vm213_vm13, %v931_v32, -1e+30  ;;  %v932_v56 = vsel %vm212_vm12, %v930_v36, -1e+30  ;;  %v1748_v32 = vld [vmem:[%s2527_s8] sm:$0xff]  ;;  %v1749_v36 = vld [vmem:[%s2527_s8 + $0x8] sm:$0xff] }
 0x796   :  { %v937_v37 = vsel %vm469_vm7, %v933_v58, -inf  ;;  %v934_v0 = vsel %vm469_vm7, %v932_v56, -inf }
 0x797   :  { %938 = vmax.xlane.f32.xlu1 %v937_v37  ;;  %935 = vmax.xlane.f32.xlu0 %v934_v0 }
 0x7ab   :  { %133 = vperm.xlu0 %1688, %v124_v16  }
 0x7b3   :  { %1690 = vset.pattern.permute.xlu0 %v1758_v40 }
 0x80a   :  { %v936_v29 = vpop.xlane.xlu0 %935  ;;  %v939_v30 = vpop.xlane.xlu1 %938 }
 0x80b   :  { %v940_v41 = vsub.f32 %v932_v56, %v936_v29  ;;  %v941_v43 = vsub.f32 %v933_v58, %v939_v30  ;;  %v1750_v56 = vld [vmem:[%s2527_s8 + $0x10] sm:$0xff] }
 0x80d   :  { %v942_v44 = vmul.f32 1.442695, %v940_v41  ;;  %v944_v45 = vmul.f32 1.442695, %v941_v43  ;;  %v1751_v43 = vld [vmem:[%s2527_s8 + $0x18] sm:$0xff] }
 0x80f   :  { %1716 = vpow2.f32 %v942_v44 }
 0x810   :  { %1718 = vpow2.f32 %v944_v45 }
 0x815   :  { %v1717_v47 = vpop.eup %1716 }
 0x816   :  { %v1719_v48 = vpop.eup %1718  ;;  %v946_v50 = vsel %vm212_vm12, %v1717_v47, 0.0 }
 0x817   :  { %v948_v51 = vsel %vm469_vm7, %v946_v50, 0.0  ;;  %v947_v52 = vsel %vm213_vm13, %v1719_v48, 0.0  ;;  %v1752_v48 = vld [vmem:[%s2527_s8 + $0x20] sm:$0xff] }
 0x818   :  { %949 = vadd.xlane.f32.xlu2 %v948_v51  ;;  %v951_v54 = vsel %vm469_vm7, %v947_v52, 0.0 }
 0x819   :  { %952 = vadd.xlane.f32.xlu1 %v951_v54 }
 0x81d   :  { %v134_v41 = vpop.permute.xlu0 %133 }
 0x81e   :  { %vm148_vm13 = vcmp.eq.s32.totalorder %v1953_v23, %v134_v41 }
 0x81f   :  { %v1573_v45 = vsel %vm148_vm13, 1.0, %v1755_v17 }
 0x830   :  { %130 = vperm.xlu2 %1687, %v123_v19  }
 0x832   :  { %136 = vperm.xlu1 %1689, %v125_v4  }
 0x838   :  { %139 = vperm.xlu2 %1687, %v126_v39   ;;  %v1326_v39 = vld [vmem:[%s2510_s18 + $0x10] sm:$0xff] }
 0x83a   :  { %142 = vperm.xlu1 %1689, %v127_v22   ;;  %v1327_v22 = vld [vmem:[%s2510_s18 + $0x18] sm:$0xff] }
 0x840   :  { %145 = vperm.xlu2 %1687, %v128_v33  }
 0x88b   :  { %v950_v3 = vpop.xlane.xlu2 %949 }
 0x88c   :  { %1720 = vrcp.f32 %v950_v3  ;;  %v953_v24 = vpop.xlane.xlu1 %952  ;;  %v1692_v3 = vld [vmem:[%s2507_s15] ss:$0 sm:$0xff] }
 0x88d   :  { %1722 = vrcp.f32 %v953_v24 }
 0x892   :  { %v1721_v5 = vpop.eup %1720 }
 0x893   :  { %v956_v6 = vmul.f32 %v1721_v5, %v946_v50  ;;  %v1723_v20 = vpop.eup %1722  ;;  %v131_v37 = vpop.permute.xlu2 %130 }
 0x894   :  { %v957_v9 = vmul.f32 %v1723_v20, %v947_v52  ;;  %vm147_vm0 = vcmp.eq.s32.totalorder %v1953_v23, %v131_v37 }
 0x895   :  { %1627 = vmatmul.msk.f32.vlgmr.msrb.gmra.mxu2 %vm469_vm7, %v956_v6  ;;  %v1572_v30 = vsel %vm147_vm0, 1.0, %v1755_v17 }
 0x89b   :  { %v140_v51 = vpop.permute.xlu2 %139 }
 0x89c   :  { %vm150_vm15 = vcmp.eq.s32.totalorder %v1953_v23, %v140_v51 }
 0x89d   :  { %1628 = vmatmul.msk.f32.gmra.mxu2 %vm469_vm7, %v957_v9  ;;  %v1575_v52 = vsel %vm150_vm15, 1.0, %v1755_v17 }
 0x8a3   :  { %v146_v18 = vpop.permute.xlu2 %145 }
 0x8a4   :  { %v137_v47 = vpop.permute.xlu1 %136 }
 0x8a5   :  { %vm149_vm14 = vcmp.eq.s32.totalorder %v1953_v23, %v137_v47 }
 0x8a6   :  { %v1574_v50 = vsel %vm149_vm14, 1.0, %v1755_v17 }
 0x8ac   :  { %v143_v54 = vpop.permute.xlu1 %142 }
 0x8ad   :  { %vm151_vm4 = vcmp.eq.s32.totalorder %v1953_v23, %v143_v54  ;;  %v1324_v54 = vld [vmem:[%s2510_s18] sm:$0xff] }
 0x918   :  { %v982_v38 = vpop.f32.mrf.mxu2 }
 0x919   :  { %v983_v26 = vadd.f32 %v982_v38, %v958_v25 }
 0x91b   :  { %vm988_vm11 = vcmp.ge.f32.partialorder %v983_v26, 0.0  ;;  %v990_v27 = vmul.f32 0.01, %v983_v26 }
 0x91d   :  { %v992_v28 = vsel %vm988_vm11, %v983_v26, %v990_v27  ;;  %v1325_v26 = vld [vmem:[%s2510_s18 + $0x8] sm:$0xff] }
 0x91e   :  { %1629 = vmatmul.msk.f32.vlgmr.msrb.gmra.mxu3 %vm885_vm8, %v992_v28  ;;  %1631 = vmatmul.msk.f32.vlgmr.msrb.gmra.mxu1 %vm885_vm8, %v992_v28 }
 0x920   :  { %v985_v31 = vpop.f32.mrf.mxu2 }
 0x921   :  { %v986_v35 = vadd.f32 %v985_v31, %v958_v25 }
 0x923   :  { %v991_v40 = vmul.f32 0.01, %v986_v35  ;;  %vm989_vm12 = vcmp.ge.f32.partialorder %v986_v35, 0.0 }
 0x925   :  { %v993_v34 = vsel %vm989_vm12, %v986_v35, %v991_v40 }
 0x926   :  { %1630 = vmatmul.msk.f32.gmra.mxu3 %vm885_vm8, %v993_v34  ;;  %1632 = vmatmul.msk.f32.gmra.mxu1 %vm885_vm8, %v993_v34 }
 0x92e   :  { %1646 = vmatmul.msk.f32.vlgmr.msra.gmra.mxu3 %vm276_vm1, %v1748_v32 }
 0x936   :  { %1647 = vmatmul.msk.f32.gmra.mxu3 %vm276_vm1, %v1749_v36 }
 0x93e   :  { %1648 = vmatmul.msk.f32.gmra.mxu3 %vm276_vm1, %v1750_v56 }
 0x946   :  { %1649 = vmatmul.msk.f32.gmra.mxu3 %vm276_vm1, %v1751_v43 }
 0x94e   :  { %1650 = vmatmul.msk.f32.gmra.mxu3 %vm276_vm1, %v1752_v48 }
 0x99b   :  { %v1056_v58 = vpop.f32.mrf.mxu1 }
 0x9a1   :  { %v1025_v0 = vpop.f32.mrf.mxu3 }
 0x9a3   :  { %v1059_v29 = vpop.f32.mrf.mxu1 }
 0x9a4   :  { %1094 = vmatpush.msrb.mxu0 %v1059_v29 }
 0x9a6   :  { %1095 = vmatpush.msrb.mxu0 %v1056_v58 }
 0x9a7   :  { %1633 = vmatmul.msk.f32.vlgmr.msrb.gmra.mxu0 %vm469_vm7, %v1572_v30 }
 0x9a8   :  { %1362 = vmatpush.msra.mxu0 %v1327_v22 }
 0x9a9   :  { %v1028_v44 = vpop.f32.mrf.mxu3 }
 0x9aa   :  { %1147 = vmatpush.msra.mxu2 %v1028_v44  ;;  %1363 = vmatpush.msra.mxu0 %v1326_v39 }
 0x9ac   :  { %1148 = vmatpush.msra.mxu2 %v1025_v0  ;;  %1364 = vmatpush.msra.mxu0 %v1325_v26 }
 0x9ad   :  { %1639 = vmatmul.msk.f32.vlgmr.msra.gmra.mxu2 %vm469_vm7, %v2049_v62  ;;  %v1753_v62 = vld [vmem:[%s2527_s8 + $0x28] sm:$0xff] }
 0x9ae   :  { %1651 = vmatmul.msk.f32.gmra.mxu3 %vm276_vm1, %v1753_v62  ;;  %vm152_vm1 = vcmp.eq.s32.totalorder %v1953_v23, %v146_v18  ;;  %v1246_v23 = vld [vmem:[%s2509_s16 + $0x28] sm:$0xff]  ;;  %1365 = vmatpush.msra.mxu0 %v1324_v54 }
 0x9af   :  { %1634 = vmatmul.msk.f32.gmra.mxu0 %vm469_vm7, %v1573_v45 }
 0x9b1   :  { %v1189_v60 = vpop.f32.mrf.mxu3 }
 0x9b5   :  { %1640 = vmatmul.msk.f32.gmra.mxu2 %vm469_vm7, %v2040_v57  ;;  %v1576_v57 = vsel %vm151_vm4, 1.0, %v1755_v17 }
 0x9b7   :  { %1635 = vmatmul.msk.f32.gmra.mxu0 %vm469_vm7, %v1574_v50 }
 0x9b9   :  { %v1192_v61 = vpop.f32.mrf.mxu3 }
 0x9bd   :  { %1641 = vmatmul.msk.f32.gmra.mxu2 %vm469_vm7, %v2033_v53  ;;  %v1577_v53 = vsel %vm152_vm1, 1.0, %v1755_v17  ;;  %v1245_v17 = vld [vmem:[%s2509_s16 + $0x20] sm:$0xff] }
 0x9bf   :  { %1636 = vmatmul.msk.f32.gmra.mxu0 %vm469_vm7, %v1575_v52 }
 0x9c1   :  { %v1195_v11 = vpop.f32.mrf.mxu3 }
 0x9c5   :  { %1642 = vmatmul.msk.f32.gmra.mxu2 %vm469_vm7, %v2024_v49  ;;  %v1248_v49 = vld [vmem:[%s2509_s16 + $0x38] sm:$0xff] }
 0x9c6   :  { %1279 = vmatpush.msra.mxu1 %v1248_v49 }
 0x9c7   :  { %1637 = vmatmul.msk.f32.gmra.mxu0 %vm469_vm7, %v1576_v57  ;;  %v1693_v57 = vld [vmem:[%s2508_s17] ss:$0 sm:$0xff] }
 0x9c8   :  { %1280 = vmatpush.msra.mxu1 %v1247_v55 }
 0x9c9   :  { %v1198_v33 = vpop.f32.mrf.mxu3 }
 0x9ca   :  { %1281 = vmatpush.msra.mxu1 %v1246_v23 }
 0x9cc   :  { %1282 = vmatpush.msra.mxu1 %v1245_v17 }
 0x9cd   :  { %1643 = vmatmul.msk.f32.gmra.mxu2 %vm469_vm7, %v2018_v46  ;;  %v1243_v46 = vld [vmem:[%s2509_s16 + $0x10] sm:$0xff] }
 0x9cf   :  { %1638 = vmatmul.msk.f32.gmra.mxu0 %vm469_vm7, %v1577_v53 }
 0x9d1   :  { %v1201_v32 = vpop.f32.mrf.mxu3 }
 0x9d5   :  { %1644 = vmatmul.msk.f32.gmra.mxu2 %vm469_vm7, %v2012_v42  ;;  %v1244_v42 = vld [vmem:[%s2509_s16 + $0x18] sm:$0xff] }
 0x9d6   :  { %1283 = vmatpush.msra.mxu1 %v1244_v42 }
 0x9d8   :  { %1284 = vmatpush.msra.mxu1 %v1243_v46 }
 0x9da   :  { %1285 = vmatpush.msra.mxu1 %v1242_v7  ;;  %v1406_v7 = vld [vmem:[%s2512_s20 + $0x18] sm:$0xff] }
 0x9db   :  { %1441 = vmatpush.msrb.mxu2 %v1406_v7 }
 0x9dc   :  { %1286 = vmatpush.msra.mxu1 %v1241_v8  ;;  %v1405_v8 = vld [vmem:[%s2512_s20 + $0x10] sm:$0xff] }
 0x9dd   :  { %1442 = vmatpush.msrb.mxu2 %v1405_v8 }
 0xa24   :  { %v1097_v21 = vpop.f32.mrf.mxu0 }
 0xa2c   :  { %v1100_v63 = vpop.f32.mrf.mxu0 }
 0xa30   :  { %v1150_v1 = vpop.f32.mrf.mxu2 }
 0xa31   :  { %v1151_v2 = vadd.f32 %v1150_v1, %v1097_v21  ;;  %v1204_v41 = vpop.f32.mrf.mxu3  ;;  %v1404_v21 = vld [vmem:[%s2512_s20 + $0x8] sm:$0xff] }
 0xa32   :  { %1443 = vmatpush.msrb.mxu2 %v1404_v21 }
 0xa33   :  { %v1207_v24 = vadd.f32 %v1189_v60, %v1151_v2 }
 0xa34   :  { %v1103_v12 = vpop.f32.mrf.mxu0 }
 0xa35   :  { %v1217_v5 = vadd.f32 %v1692_v3, %v1207_v24 }
 0xa37   :  { %vm1223_vm7 = vcmp.ge.f32.partialorder %v1217_v5, 0.0  ;;  %v1229_v6 = vmul.f32 0.01, %v1217_v5 }
 0xa38   :  { %v1153_v20 = vpop.f32.mrf.mxu2 }
 0xa39   :  { %v1154_v9 = vadd.f32 %v1153_v20, %v1100_v63  ;;  %v1235_v10 = vsel %vm1223_vm7, %v1217_v5, %v1229_v6 }
 0xa3a   :  { %1652 = vmatmul.msk.f32.vlgmr.msra.gmra.mxu1 %vm885_vm8, %v1235_v10 }
 0xa3b   :  { %v1208_v13 = vadd.f32 %v1192_v61, %v1154_v9 }
 0xa3c   :  { %v1106_v38 = vpop.f32.mrf.mxu0 }
 0xa3d   :  { %v1218_v14 = vadd.f32 %v1692_v3, %v1208_v13 }
 0xa3f   :  { %vm1224_vm5 = vcmp.ge.f32.partialorder %v1218_v14, 0.0  ;;  %v1230_v59 = vmul.f32 0.01, %v1218_v14 }
 0xa40   :  { %v1156_v16 = vpop.f32.mrf.mxu2 }
 0xa41   :  { %v1157_v4 = vadd.f32 %v1156_v16, %v1103_v12  ;;  %v1236_v19 = vsel %vm1224_vm5, %v1218_v14, %v1230_v59  ;;  %v1403_v59 = vld [vmem:[%s2512_s20] sm:$0xff] }
 0xa42   :  { %1653 = vmatmul.msk.f32.gmra.mxu1 %vm885_vm8, %v1236_v19  ;;  %1444 = vmatpush.msrb.mxu2 %v1403_v59  ;;  %v1694_v16 = vld [vmem:[%s2511_s19] ss:$0 sm:$0xff] }
 0xa43   :  { %v1209_v25 = vadd.f32 %v1195_v11, %v1157_v4 }
 0xa44   :  { %v1109_v36 = vpop.f32.mrf.mxu0 }
 0xa45   :  { %v1219_v27 = vadd.f32 %v1692_v3, %v1209_v25 }
 0xa47   :  { %vm1225_vm3 = vcmp.ge.f32.partialorder %v1219_v27, 0.0  ;;  %v1231_v28 = vmul.f32 0.01, %v1219_v27 }
 0xa48   :  { %v1159_v31 = vpop.f32.mrf.mxu2 }
 0xa49   :  { %v1160_v35 = vadd.f32 %v1159_v31, %v1106_v38  ;;  %v1237_v40 = vsel %vm1225_vm3, %v1219_v27, %v1231_v28 }
 0xa4a   :  { %1654 = vmatmul.msk.f32.gmra.mxu1 %vm885_vm8, %v1237_v40 }
 0xa4b   :  { %v1210_v34 = vadd.f32 %v1198_v33, %v1160_v35 }
 0xa4c   :  { %v1112_v44 = vpop.f32.mrf.mxu0 }
 0xa4d   :  { %v1220_v15 = vadd.f32 %v1692_v3, %v1210_v34 }
 0xa4f   :  { %vm1226_vm6 = vcmp.ge.f32.partialorder %v1220_v15, 0.0  ;;  %v1232_v58 = vmul.f32 0.01, %v1220_v15 }
 0xa50   :  { %v1162_v56 = vpop.f32.mrf.mxu2 }
 0xa51   :  { %v1163_v37 = vadd.f32 %v1162_v56, %v1109_v36  ;;  %v1238_v0 = vsel %vm1226_vm6, %v1220_v15, %v1232_v58  ;;  %vm1555_vm6 = vcmask 15360  }
 0xa52   :  { %1655 = vmatmul.msk.f32.gmra.mxu1 %vm885_vm8, %v1238_v0 }
 0xa53   :  { %v1211_v29 = vadd.f32 %v1201_v32, %v1163_v37 }
 0xa55   :  { %v1221_v30 = vadd.f32 %v1692_v3, %v1211_v29 }
 0xa57   :  { %vm1227_vm9 = vcmp.ge.f32.partialorder %v1221_v30, 0.0  ;;  %v1233_v43 = vmul.f32 0.01, %v1221_v30 }
 0xa58   :  { %v1165_v45 = vpop.f32.mrf.mxu2 }
 0xa59   :  { %v1166_v47 = vadd.f32 %v1165_v45, %v1112_v44  ;;  %v1239_v48 = vsel %vm1227_vm9, %v1221_v30, %v1233_v43  ;;  %v1695_v43 = vld [vmem:[%s2513_s21] ss:$0 sm:$0xff]  ;;  %s1760_s21 = smov 1  }
 0xa5a   :  { %1656 = vmatmul.msk.f32.gmra.mxu1 %vm885_vm8, %v1239_v48 }
 0xa5b   :  { %v1212_v50 = vadd.f32 %v1204_v41, %v1166_v47 }
 0xa5d   :  { %v1222_v62 = vadd.f32 %v1692_v3, %v1212_v50 }
 0xa5f   :  { %vm1228_vm10 = vcmp.ge.f32.partialorder %v1222_v62, 0.0  ;;  %v1234_v51 = vmul.f32 0.01, %v1222_v62 }
 0xa61   :  { %v1240_v52 = vsel %vm1228_vm10, %v1222_v62, %v1234_v51 }
 0xa62   :  { %1657 = vmatmul.msk.f32.gmra.mxu1 %vm885_vm8, %v1240_v52 }
 0xab7   :  { %v1288_v18 = vpop.f32.mrf.mxu1 }
 0xab8   :  { %v1289_v53 = vadd.f32 %v1693_v57, %v1288_v18 }
 0xaba   :  { %vm1306_vm11 = vcmp.ge.f32.partialorder %v1289_v53, 0.0  ;;  %v1312_v49 = vmul.f32 0.01, %v1289_v53 }
 0xabc   :  { %v1318_v55 = vsel %vm1306_vm11, %v1289_v53, %v1312_v49 }
 0xabd   :  { %1658 = vmatmul.msk.f32.vlgmr.msra.gmra.mxu0 %vm676_vm2, %v1318_v55 }
 0xabf   :  { %v1291_v23 = vpop.f32.mrf.mxu1 }
 0xac0   :  { %v1292_v17 = vadd.f32 %v1693_v57, %v1291_v23 }
 0xac2   :  { %v1313_v42 = vmul.f32 0.01, %v1292_v17  ;;  %vm1307_vm8 = vcmp.ge.f32.partialorder %v1292_v17, 0.0 }
 0xac4   :  { %v1319_v46 = vsel %vm1307_vm8, %v1292_v17, %v1313_v42 }
 0xac5   :  { %1659 = vmatmul.msk.f32.gmra.mxu0 %vm676_vm2, %v1319_v46 }
 0xac7   :  { %v1294_v60 = vpop.f32.mrf.mxu1 }
 0xac8   :  { %v1295_v61 = vadd.f32 %v1693_v57, %v1294_v60 }
 0xaca   :  { %v1314_v63 = vmul.f32 0.01, %v1295_v61  ;;  %vm1308_vm12 = vcmp.ge.f32.partialorder %v1295_v61, 0.0 }
 0xacc   :  { %v1320_v1 = vsel %vm1308_vm12, %v1295_v61, %v1314_v63 }
 0xacd   :  { %1660 = vmatmul.msk.f32.gmra.mxu0 %vm676_vm2, %v1320_v1 }
 0xacf   :  { %v1297_v2 = vpop.f32.mrf.mxu1 }
 0xad0   :  { %v1298_v3 = vadd.f32 %v1693_v57, %v1297_v2 }
 0xad2   :  { %v1315_v24 = vmul.f32 0.01, %v1298_v3  ;;  %vm1309_vm0 = vcmp.ge.f32.partialorder %v1298_v3, 0.0 }
 0xad4   :  { %v1321_v5 = vsel %vm1309_vm0, %v1298_v3, %v1315_v24 }
 0xad5   :  { %1661 = vmatmul.msk.f32.gmra.mxu0 %vm676_vm2, %v1321_v5 }
 0xad7   :  { %v1300_v6 = vpop.f32.mrf.mxu1 }
 0xad8   :  { %v1301_v20 = vadd.f32 %v1693_v57, %v1300_v6 }
 0xada   :  { %v1316_v9 = vmul.f32 0.01, %v1301_v20  ;;  %vm1310_vm13 = vcmp.ge.f32.partialorder %v1301_v20, 0.0 }
 0xadc   :  { %v1322_v10 = vsel %vm1310_vm13, %v1301_v20, %v1316_v9 }
 0xadd   :  { %1662 = vmatmul.msk.f32.gmra.mxu0 %vm676_vm2, %v1322_v10 }
 0xadf   :  { %v1303_v11 = vpop.f32.mrf.mxu1 }
 0xae0   :  { %v1304_v12 = vadd.f32 %v1693_v57, %v1303_v11 }
 0xae2   :  { %v1317_v13 = vmul.f32 0.01, %v1304_v12  ;;  %vm1311_vm14 = vcmp.ge.f32.partialorder %v1304_v12, 0.0 }
 0xae4   :  { %v1323_v14 = vsel %vm1311_vm14, %v1304_v12, %v1317_v13 }
 0xae5   :  { %1663 = vmatmul.msk.f32.gmra.mxu0 %vm676_vm2, %v1323_v14 }
 0xb3a   :  { %v1367_v4 = vpop.f32.mrf.mxu0 }
 0xb3b   :  { %v1368_v19 = vadd.f32 %v1694_v16, %v1367_v4 }
 0xb3d   :  { %vm1385_vm15 = vcmp.ge.f32.partialorder %v1368_v19, 0.0  ;;  %v1391_v22 = vmul.f32 0.01, %v1368_v19 }
 0xb3f   :  { %v1397_v39 = vsel %vm1385_vm15, %v1368_v19, %v1391_v22 }
 0xb40   :  { %1664 = vmatmul.msk.f32.vlgmr.msrb.gmra.mxu2 %vm676_vm2, %v1397_v39 }
 0xb42   :  { %v1370_v25 = vpop.f32.mrf.mxu0 }
 0xb43   :  { %v1371_v33 = vadd.f32 %v1694_v16, %v1370_v25 }
 0xb45   :  { %v1392_v38 = vmul.f32 0.01, %v1371_v33  ;;  %vm1386_vm4 = vcmp.ge.f32.partialorder %v1371_v33, 0.0 }
 0xb47   :  { %v1398_v26 = vsel %vm1386_vm4, %v1371_v33, %v1392_v38 }
 0xb48   :  { %1665 = vmatmul.msk.f32.gmra.mxu2 %vm676_vm2, %v1398_v26 }
 0xb4a   :  { %v1373_v27 = vpop.f32.mrf.mxu0 }
 0xb4b   :  { %v1374_v28 = vadd.f32 %v1694_v16, %v1373_v27 }
 0xb4d   :  { %v1393_v31 = vmul.f32 0.01, %v1374_v28  ;;  %vm1387_vm1 = vcmp.ge.f32.partialorder %v1374_v28, 0.0 }
 0xb4f   :  { %v1399_v35 = vsel %vm1387_vm1, %v1374_v28, %v1393_v31 }
 0xb50   :  { %1666 = vmatmul.msk.f32.gmra.mxu2 %vm676_vm2, %v1399_v35 }
 0xb52   :  { %v1376_v40 = vpop.f32.mrf.mxu0 }
 0xb53   :  { %v1377_v34 = vadd.f32 %v1694_v16, %v1376_v40 }
 0xb55   :  { %v1394_v15 = vmul.f32 0.01, %v1377_v34  ;;  %vm1388_vm7 = vcmp.ge.f32.partialorder %v1377_v34, 0.0 }
 0xb57   :  { %v1400_v32 = vsel %vm1388_vm7, %v1377_v34, %v1394_v15 }
 0xb58   :  { %1667 = vmatmul.msk.f32.gmra.mxu2 %vm676_vm2, %v1400_v32 }
 0xb5a   :  { %v1379_v36 = vpop.f32.mrf.mxu0 }
 0xb5b   :  { %v1380_v58 = vadd.f32 %v1694_v16, %v1379_v36 }
 0xb5d   :  { %v1395_v56 = vmul.f32 0.01, %v1380_v58  ;;  %vm1389_vm5 = vcmp.ge.f32.partialorder %v1380_v58, 0.0 }
 0xb5f   :  { %v1401_v37 = vsel %vm1389_vm5, %v1380_v58, %v1395_v56 }
 0xb60   :  { %1668 = vmatmul.msk.f32.gmra.mxu2 %vm676_vm2, %v1401_v37 }
 0xb62   :  { %v1382_v0 = vpop.f32.mrf.mxu0 }
 0xb63   :  { %v1383_v29 = vadd.f32 %v1694_v16, %v1382_v0 }
 0xb65   :  { %v1396_v30 = vmul.f32 0.01, %v1383_v29  ;;  %vm1390_vm3 = vcmp.ge.f32.partialorder %v1383_v29, 0.0 }
 0xb67   :  { %v1402_v41 = vsel %vm1390_vm3, %v1383_v29, %v1396_v30 }
 0xb68   :  { %1669 = vmatmul.msk.f32.gmra.mxu2 %vm676_vm2, %v1402_v41  ;;  %vm1548_vm2 = vcmask 7168  }
 0xbc3   :  { %v1446_v44 = vpop.f32.mrf.mxu2 }
 0xbc4   :  { %v1447_v45 = vadd.f32 %v1695_v43, %v1446_v44 }
 0xbc6   :  { %v1464_v47 = vsub.f32 0.0, %v1447_v45  ;;  %1500 = vrot.lane.b32.xlu1 %v1447_v45, %s1759_s0 }
 0xbc8   :  { %v1470_v48 = vmul.f32 1.442695, %v1464_v47 }
 0xbca   :  { %1724 = vpow2.f32 %v1470_v48 }
 0xbcb   :  { %v1449_v50 = vpop.f32.mrf.mxu2 }
 0xbcc   :  { %v1450_v62 = vadd.f32 %v1695_v43, %v1449_v50 }
 0xbce   :  { %v1465_v51 = vsub.f32 0.0, %v1450_v62  ;;  %1502 = vrot.lane.b32.xlu2 %v1450_v62, %s1759_s0 }
 0xbd0   :  { %v1725_v52 = vpop.eup %1724  ;;  %v1472_v54 = vmul.f32 1.442695, %v1465_v51 }
 0xbd1   :  { %v1482_v57 = vadd.f32 1.0, %v1725_v52 }
 0xbd2   :  { %1726 = vpow2.f32 %v1472_v54 }
 0xbd3   :  { %1728 = vrcp.f32 %v1482_v57  ;;  %v1452_v18 = vpop.f32.mrf.mxu2 }
 0xbd4   :  { %v1453_v53 = vadd.f32 %v1695_v43, %v1452_v18 }
 0xbd6   :  { %v1466_v49 = vsub.f32 0.0, %v1453_v53  ;;  %1504 = vrot.lane.b32.xlu0 %v1453_v53, %s1759_s0 }
 0xbd8   :  { %v1727_v55 = vpop.eup %1726  ;;  %v1474_v23 = vmul.f32 1.442695, %v1466_v49 }
 0xbd9   :  { %v1729_v17 = vpop.eup %1728  ;;  %v1483_v42 = vadd.f32 1.0, %v1727_v55 }
 0xbda   :  { %1730 = vpow2.f32 %v1474_v23  ;;  %1530 = vrot.lane.b32.xlu1 %v1729_v17, %s1760_s21 }
 0xbdb   :  { %1732 = vrcp.f32 %v1483_v42  ;;  %v1455_v46 = vpop.f32.mrf.mxu2 }
 0xbdc   :  { %v1456_v7 = vadd.f32 %v1695_v43, %v1455_v46 }
 0xbde   :  { %v1467_v8 = vsub.f32 0.0, %v1456_v7 }
 0xbe0   :  { %v1731_v60 = vpop.eup %1730  ;;  %v1476_v21 = vmul.f32 1.442695, %v1467_v8 }
 0xbe1   :  { %v1733_v61 = vpop.eup %1732  ;;  %v1484_v63 = vadd.f32 1.0, %v1731_v60 }
 0xbe2   :  { %1734 = vpow2.f32 %v1476_v21  ;;  %1532 = vrot.lane.b32.xlu2 %v1733_v61, %s1760_s21  ;;  %1506 = vrot.lane.b32.xlu1 %v1456_v7, %s1759_s0 }
 0xbe3   :  { %1736 = vrcp.f32 %v1484_v63  ;;  %v1458_v1 = vpop.f32.mrf.mxu2 }
 0xbe4   :  { %v1459_v2 = vadd.f32 %v1695_v43, %v1458_v1 }
 0xbe6   :  { %v1468_v3 = vsub.f32 0.0, %v1459_v2 }
 0xbe8   :  { %v1735_v24 = vpop.eup %1734  ;;  %v1478_v5 = vmul.f32 1.442695, %v1468_v3 }
 0xbe9   :  { %v1737_v6 = vpop.eup %1736  ;;  %v1485_v20 = vadd.f32 1.0, %v1735_v24 }
 0xbea   :  { %1738 = vpow2.f32 %v1478_v5  ;;  %1534 = vrot.lane.b32.xlu0 %v1737_v6, %s1760_s21  ;;  %1508 = vrot.lane.b32.xlu2 %v1459_v2, %s1759_s0 }
 0xbeb   :  { %1740 = vrcp.f32 %v1485_v20  ;;  %v1461_v9 = vpop.f32.mrf.mxu2 }
 0xbec   :  { %v1462_v10 = vadd.f32 %v1695_v43, %v1461_v9 }
 0xbee   :  { %v1469_v11 = vsub.f32 0.0, %v1462_v10 }
 0xbf0   :  { %v1739_v12 = vpop.eup %1738  ;;  %v1480_v13 = vmul.f32 1.442695, %v1469_v11 }
 0xbf1   :  { %v1741_v14 = vpop.eup %1740  ;;  %v1486_v59 = vadd.f32 1.0, %v1739_v12 }
 0xbf2   :  { %1742 = vpow2.f32 %v1480_v13  ;;  %1536 = vrot.lane.b32.xlu1 %v1741_v14, %s1760_s21  ;;  %1510 = vrot.lane.b32.xlu0 %v1462_v10, %s1759_s0 }
 0xbf3   :  { %1744 = vrcp.f32 %v1486_v59 }
 0xbf8   :  { %v1743_v16 = vpop.eup %1742 }
 0xbf9   :  { %v1745_v4 = vpop.eup %1744  ;;  %v1487_v19 = vadd.f32 1.0, %v1743_v16 }
 0xbfa   :  { %1538 = vrot.lane.b32.xlu2 %v1745_v4, %s1760_s21 }
 0xbfb   :  { %1746 = vrcp.f32 %v1487_v19 }
 0xc01   :  { %v1747_v22 = vpop.eup %1746 }
 0xc02   :  { %1540 = vrot.lane.b32.xlu0 %v1747_v22, %s1760_s21 }
 0xc28   :  { %v1503_v39 = vpop.permute.xlu2 %1502 }
 0xc29   :  { %v1519_v25 = vmul.f32 %v1733_v61, %v1503_v39 }
 0xc38   :  { %v1501_v26 = vpop.permute.xlu1 %1500 }
 0xc39   :  { %v1518_v27 = vmul.f32 %v1729_v17, %v1501_v26 }
 0xc3c   :  { %v1533_v33 = vpop.permute.xlu2 %1532 }
 0xc3d   :  { %v1550_v38 = vsel %vm1548_vm2, %v1519_v25, %v1533_v33 }
 0xc3e   :  { %1557 = vst.msk [vmem:[%s2514_s22 + $0x8] sm:$0xff] %vm1555_vm6, %v1550_v38 }
 0xc44   :  { %v1509_v28 = vpop.permute.xlu2 %1508 }
 0xc45   :  { %v1522_v40 = vmul.f32 %v1745_v4, %v1509_v28 }
 0xc48   :  { %v1505_v34 = vpop.permute.xlu0 %1504 }
 0xc49   :  { %v1520_v36 = vmul.f32 %v1737_v6, %v1505_v34 }
 0xc4c   :  { %v1531_v31 = vpop.permute.xlu1 %1530 }
 0xc4d   :  { %v1549_v35 = vsel %vm1548_vm2, %v1518_v27, %v1531_v31 }
 0xc4e   :  { %1556 = vst.msk [vmem:[%s2514_s22] sm:$0xff] %vm1555_vm6, %v1549_v35 }
 0xc54   :  { %v1539_v15 = vpop.permute.xlu2 %1538  ;;  %v1507_v58 = vpop.permute.xlu1 %1506 }
 0xc55   :  { %v1553_v32 = vsel %vm1548_vm2, %v1522_v40, %v1539_v15  ;;  %v1521_v0 = vmul.f32 %v1741_v14, %v1507_v58 }
 0xc56   :  { %1560 = vst.msk [vmem:[%s2514_s22 + $0x20] sm:$0xff] %vm1555_vm6, %v1553_v32 }
 0xc5c   :  { %v1535_v56 = vpop.permute.xlu0 %1534 }
 0xc5d   :  { %v1551_v37 = vsel %vm1548_vm2, %v1520_v36, %v1535_v56 }
 0xc5e   :  { %1558 = vst.msk [vmem:[%s2514_s22 + $0x10] sm:$0xff] %vm1555_vm6, %v1551_v37 }
 0xc64   :  { %v1537_v29 = vpop.permute.xlu1 %1536  ;;  %v1511_v41 = vpop.permute.xlu0 %1510 }
 0xc65   :  { %v1552_v30 = vsel %vm1548_vm2, %v1521_v0, %v1537_v29  ;;  %v1523_v43 = vmul.f32 %v1747_v22, %v1511_v41 }
 0xc66   :  { %1559 = vst.msk [vmem:[%s2514_s22 + $0x18] sm:$0xff] %vm1555_vm6, %v1552_v30 }
 0xc74   :  { %v1541_v44 = vpop.permute.xlu0 %1540 }
 0xc75   :  { %v1554_v45 = vsel %vm1548_vm2, %v1523_v43, %v1541_v44 }
 0xc76   :  { %1561 = vst.msk [vmem:[%s2514_s22 + $0x28] sm:$0xff] %vm1555_vm6, %v1554_v45 }

</bundles_post_ra>
